<compile_context>
chip_gen: v7x
topology: tpu7x:2x2x1
jax: 0.10.0
libtpu: 0.0.40
codegen_flags: <defaults>
</compile_context>

<pallas_src>
import math
import functools

import jax
import jax.numpy as jnp
from jax.experimental import pallas as pl
from jax.experimental.pallas import tpu as pltpu

# ----------------------------- config (small, synthetic) --------------------
B = 2          # batch
S = 8          # sequence length
H = 32         # hidden size          (real BERT: 768)
NH = 4         # attention heads      (real BERT: 12)
DH = H // NH   # head dim
I = 64         # intermediate size    (real BERT: 3072)
L = 2          # number of layers     (real BERT: 12)
VOCAB = 64     # vocab size           (real BERT: 28996)
MAX_POS = 16
LN_EPS = 1e-12


def _layer_norm(x, g, b, eps=LN_EPS):
    mu = jnp.mean(x, axis=-1, keepdims=True)
    var = jnp.mean(jnp.square(x - mu), axis=-1, keepdims=True)
    return (x - mu) * jax.lax.rsqrt(var + eps) * g + b


def _gelu(x):
    # TODO(synk): HF BERT uses the exact erf GELU; the tanh approximation here
    # (used in both kernel and reference) differs from it by ~1e-3.
    c = math.sqrt(2.0 / math.pi)
    return 0.5 * x * (1.0 + jnp.tanh(c * (x + 0.044715 * x * x * x)))


# ----------------------------- Pallas kernel: all layers, fused --------------
def bert_encoder_kernel(x_ref, neg_ref,
                        wq_ref, bq_ref, wk_ref, bk_ref, wv_ref, bv_ref,
                        wo_ref, bo_ref, ln1g_ref, ln1b_ref,
                        wi_ref, bi_ref, wf_ref, bf_ref, ln2g_ref, ln2b_ref,
                        y_ref, attn0_ref, h_ref,
                        *, batch, seq, num_heads, head_dim):
    layer = pl.program_id(0)

    # Layer 0: seed the VMEM-resident hidden state from the embedding output.
    @pl.when(layer == 0)
    def _():
        h_ref[...] = x_ref[...]

    x = h_ref[...]                                    # (B*S, H) f32, resident
    xb = x.astype(jnp.bfloat16)                       # MXU operands in bf16
    neg = neg_ref[...]                                # (B*S, B*S) additive mask

    # --- self-attention (QKV projections: bf16 MXU, f32 accumulate) --------
    q = jnp.dot(xb, wq_ref[0], preferred_element_type=jnp.float32) + bq_ref[0]
    k = jnp.dot(xb, wk_ref[0], preferred_element_type=jnp.float32) + bk_ref[0]
    v = jnp.dot(xb, wv_ref[0], preferred_element_type=jnp.float32) + bv_ref[0]

    scale = 1.0 / math.sqrt(head_dim)
    attn_out = jnp.zeros_like(x)                      # (B*S, H) f32 accumulator
    p_sum = jnp.zeros_like(neg)                       # head-summed probs
    for h in range(num_heads):                        # static unroll (NH small)
        lo, hi = h * head_dim, (h + 1) * head_dim
        qh, kh, vh = q[:, lo:hi], k[:, lo:hi], v[:, lo:hi]        # (B*S, DH)
        # scores over the flattened token axis; no materialized transpose.
        s = jnp.einsum("qd,kd->qk", qh, kh,
                       preferred_element_type=jnp.float32) * scale + neg
        s = s - jnp.max(s, axis=-1, keepdims=True)
        e = jnp.exp(s)
        p = e * pl.reciprocal(jnp.sum(e, axis=-1, keepdims=True), approx=True)
        p_sum = p_sum + p
        ctx_h = jnp.dot(p, vh, preferred_element_type=jnp.float32)  # (B*S, DH)
        # Fold head h straight into its Wo row-slice -> no lane concatenate.
        attn_out = attn_out + jnp.dot(ctx_h.astype(jnp.bfloat16),
                                      wo_ref[0, lo:hi, :],
                                      preferred_element_type=jnp.float32)

    attn_out = attn_out + bo_ref[0]
    h1 = _layer_norm(x + attn_out, ln1g_ref[0], ln1b_ref[0])

    # --- feed-forward -------------------------------------------------------
    inter = _gelu(jnp.dot(h1.astype(jnp.bfloat16), wi_ref[0],
                          preferred_element_type=jnp.float32) + bi_ref[0])
    ffn = jnp.dot(inter.astype(jnp.bfloat16), wf_ref[0],
                  preferred_element_type=jnp.float32) + bf_ref[0]
    y = _layer_norm(h1 + ffn, ln2g_ref[0], ln2b_ref[0])

    h_ref[...] = y                        # stays resident for the next layer
    y_ref[...] = y.astype(y_ref.dtype)    # final HBM writeback = last layer

    # Downstream only needs attentions[-1][:, :, 0, 1:].mean(heads): emit the
    # head-mean of query-row 0 (CLS) per batch element (last write wins).
    p_mean = p_sum * (1.0 / num_heads)
    rows = [p_mean[b * seq:b * seq + 1, b * seq:(b + 1) * seq]
            for b in range(batch)]
    attn0_ref[...] = jnp.concatenate(rows, axis=0)    # (B, S)


def bert_layers(hidden_flat, neg_mask, p):
    """hidden_flat: (B*S, H) f32, neg_mask: (B*S, B*S) f32 additive mask."""
    kernel = functools.partial(bert_encoder_kernel, batch=B, seq=S,
                               num_heads=NH, head_dim=DH)
    whole = lambda shape: pl.BlockSpec(shape, lambda l: (0,) * len(shape))
    per_layer = lambda shape: pl.BlockSpec(
        (1,) + shape, lambda l, _n=len(shape): (l,) + (0,) * _n)
    return pl.pallas_call(
        kernel,
        out_shape=(jax.ShapeDtypeStruct((B * S, H), jnp.float32),
                   jax.ShapeDtypeStruct((B, S), jnp.float32)),
        grid=(L,),
        in_specs=[
            whole((B * S, H)),          # embedding output (read at layer 0)
            whole((B * S, B * S)),      # additive attention mask
            per_layer((H, H)), per_layer((1, H)),   # Wq, bq
            per_layer((H, H)), per_layer((1, H)),   # Wk, bk
            per_layer((H, H)), per_layer((1, H)),   # Wv, bv
            per_layer((H, H)), per_layer((1, H)),   # Wo, bo
            per_layer((1, H)), per_layer((1, H)),   # LN1 gamma/beta
            per_layer((H, I)), per_layer((1, I)),   # Wi, bi
            per_layer((I, H)), per_layer((1, H)),   # Wf, bf
            per_layer((1, H)), per_layer((1, H)),   # LN2 gamma/beta
        ],
        out_specs=(whole((B * S, H)),   # hidden: constant block index -> VMEM
                   whole((B, S))),      # resident across the layer axis
        scratch_shapes=[pltpu.VMEM((B * S, H), jnp.float32)],
        # Layer axis is sequential ("arbitrary").  At real BERT sizes add a
        # leading "parallel" batch-tile axis (feeds both v7x TensorCores) and
        # raise vmem_limit_bytes so the bf16 weights stay double-buffered.
        compiler_params=pltpu.CompilerParams(dimension_semantics=("arbitrary",)),
    )(hidden_flat, neg_mask,
      p["wq"], p["bq"], p["wk"], p["bk"], p["wv"], p["bv"],
      p["wo"], p["bo"], p["ln1_g"], p["ln1_b"],
      p["wi"], p["bi"], p["wf"], p["bf"], p["ln2_g"], p["ln2_b"])


# ----------------------------- parameter init --------------------------------
def init_params(key):
    def normal(k, shape, scale=0.02, dtype=jnp.float32):
        return (scale * jax.random.normal(k, shape, dtype=jnp.float32)).astype(dtype)

    keys = jax.random.split(key, 15)
    bf16 = jnp.bfloat16
    return {
        "word_emb": normal(keys[0], (VOCAB, H)),
        "pos_emb": normal(keys[1], (MAX_POS, H)),
        "type_emb": normal(keys[2], (2, H)),
        "emb_ln_g": jnp.ones((H,), jnp.float32),
        "emb_ln_b": jnp.zeros((H,), jnp.float32),
        # layer-stacked weights; matmul weights in bf16 (MXU-native, half DMA)
        "wq": normal(keys[3], (L, H, H), dtype=bf16),
        "wk": normal(keys[4], (L, H, H), dtype=bf16),
        "wv": normal(keys[5], (L, H, H), dtype=bf16),
        "wo": normal(keys[6], (L, H, H), dtype=bf16),
        "wi": normal(keys[7], (L, H, I), dtype=bf16),
        "wf": normal(keys[8], (L, I, H), dtype=bf16),
        "bq": normal(keys[9], (L, 1, H)),
        "bk": normal(keys[10], (L, 1, H)),
        "bv": normal(keys[11], (L, 1, H)),
        "bo": normal(keys[12], (L, 1, H)),
        "bi": normal(keys[13], (L, 1, I)),
        "bf": normal(keys[14], (L, 1, H)),
        "ln1_g": jnp.ones((L, 1, H), jnp.float32),
        "ln1_b": jnp.zeros((L, 1, H), jnp.float32),
        "ln2_g": jnp.ones((L, 1, H), jnp.float32),
        "ln2_b": jnp.zeros((L, 1, H), jnp.float32),
    }


# ----------------------------- full forward (BertEncoder.forward) ------------
def bert_encoder_forward(params, input_ids, attention_mask, token_type_ids):
    # Embeddings (glue: gathers + LayerNorm in plain JAX).
    pos_ids = jnp.arange(S)[None, :]
    emb = (params["word_emb"][input_ids]
           + params["pos_emb"][pos_ids]
           + params["type_emb"][token_type_ids])
    hidden = _layer_norm(emb, params["emb_ln_g"], params["emb_ln_b"])   # (B,S,H)

    # Additive mask over the flattened (B*S) token axis: -1e9 for cross-batch
    # pairs and padded keys, 0 otherwise (lets attention run batch-fused).
    key_ok = attention_mask.astype(jnp.float32).reshape(-1) > 0.5       # (B*S,)
    batch_of = jnp.repeat(jnp.arange(B), S)                             # (B*S,)
    same_batch = batch_of[:, None] == batch_of[None, :]
    neg = jnp.where(same_batch & key_ok[None, :], 0.0, -1e9).astype(jnp.float32)

    hidden_flat, attn0 = bert_layers(hidden.reshape(B * S, H), neg, params)
    hidden_out = hidden_flat.reshape(B, S, H)

    # outputs.attentions[-1][:, :, 0, 1:].mean(dim=1) — head-mean done in-kernel.
    last_atten_pt = attn0[:, 1:]                                        # (B, S-1)

    # TODO(synk): aggregate_tokens / sentence decoding depend on the HF
    # tokenizer vocabulary and data-dependent Python string loops — no clean
    # Pallas equivalent; hidden states are returned un-aggregated.
    all_feat = hidden_out                                               # last_n_layers == 1
    report_feat = all_feat[:, 0]                                        # (B, H)  CLS
    word_feat = all_feat[:, 1:]                                         # (B, S-1, H)
    sents = None
    return report_feat, word_feat, last_atten_pt, sents


# ----------------------------- pure-JAX reference (correctness check) --------
def bert_layer_ref(x, neg4, p, l):
    """x: (B,S,H) f32; neg4: (B,1,1,S).  Mirrors the kernel's bf16 MXU casts."""
    xb = x.astype(jnp.bfloat16)
    proj = lambda a, w: jnp.einsum("bsh,hk->bsk", a, w,
                                   preferred_element_type=jnp.float32)
    q = proj(xb, p["wq"][l]) + p["bq"][l]
    k = proj(xb, p["wk"][l]) + p["bk"][l]
    v = proj(xb, p["wv"][l]) + p["bv"][l]
    split = lambda t: t.reshape(B, S, NH, DH).transpose(0, 2, 1, 3)
    qh, kh, vh = split(q), split(k), split(v)
    s = jnp.einsum("bhqd,bhkd->bhqk", qh, kh) * (1.0 / math.sqrt(DH)) + neg4
    pr = jax.nn.softmax(s, axis=-1)
    ctx = jnp.einsum("bhqk,bhkd->bhqd", pr, vh).transpose(0, 2, 1, 3).reshape(B, S, H)
    attn_out = proj(ctx.astype(jnp.bfloat16), p["wo"][l]) + p["bo"][l]
    h1 = _layer_norm(x + attn_out, p["ln1_g"][l], p["ln1_b"][l])
    inter = _gelu(jnp.einsum("bsh,hi->bsi", h1.astype(jnp.bfloat16), p["wi"][l],
                             preferred_element_type=jnp.float32) + p["bi"][l])
    ffn = jnp.einsum("bsi,ih->bsh", inter.astype(jnp.bfloat16), p["wf"][l],
                     preferred_element_type=jnp.float32) + p["bf"][l]
    y = _layer_norm(h1 + ffn, p["ln2_g"][l], p["ln2_b"][l])
    return y, pr


if __name__ == "__main__":
    key = jax.random.PRNGKey(0)
    k_param, k_ids = jax.random.split(key)
    params = init_params(k_param)

    input_ids = jax.random.randint(k_ids, (B, S), 0, VOCAB, dtype=jnp.int32)
    attention_mask = jnp.ones((B, S), jnp.float32).at[1, -2:].set(0.0)
    token_type_ids = jnp.zeros((B, S), jnp.int32)

    report_feat, word_feat, last_atten_pt, _ = bert_encoder_forward(
        params, input_ids, attention_mask, token_type_ids)
    jax.block_until_ready((report_feat, word_feat, last_atten_pt))

    # Cross-check the fused Pallas encoder against a pure-JAX reference.
    pos_ids = jnp.arange(S)[None, :]
    emb = (params["word_emb"][input_ids] + params["pos_emb"][pos_ids]
           + params["type_emb"][token_type_ids])
    href = _layer_norm(emb, params["emb_ln_g"], params["emb_ln_b"])
    neg4 = (1.0 - attention_mask.astype(jnp.float32))[:, None, None, :] * (-1e9)
    pref = None
    for l in range(L):
        href, pref = bert_layer_ref(href, neg4, params, l)
    ref_report = href[:, 0]
    ref_word = href[:, 1:]
    ref_attn = pref[:, :, 0, 1:].mean(axis=1)

    # bf16 MXU operands + approx-reciprocal softmax -> compare at 2e-3.
    assert jnp.allclose(report_feat, ref_report, atol=2e-3), "report_feat mismatch"
    assert jnp.allclose(word_feat, ref_word, atol=2e-3), "word_feat mismatch"
    assert jnp.allclose(last_atten_pt, ref_attn, atol=2e-3), "attention mismatch"

    print("KERNEL_OK")
</pallas_src>

<mosaic_0001>
module attributes {stable_mosaic.version = 11 : i64} {
  func.func @bert_encoder_kernel(%arg0: i32, %arg1: memref<16x32xf32, #tpu.memory_space<vmem>>, %arg2: memref<16x16xf32, #tpu.memory_space<vmem>>, %arg3: memref<1x32x32xbf16, #tpu.memory_space<vmem>>, %arg4: memref<1x1x32xf32, #tpu.memory_space<vmem>>, %arg5: memref<1x32x32xbf16, #tpu.memory_space<vmem>>, %arg6: memref<1x1x32xf32, #tpu.memory_space<vmem>>, %arg7: memref<1x32x32xbf16, #tpu.memory_space<vmem>>, %arg8: memref<1x1x32xf32, #tpu.memory_space<vmem>>, %arg9: memref<1x32x32xbf16, #tpu.memory_space<vmem>>, %arg10: memref<1x1x32xf32, #tpu.memory_space<vmem>>, %arg11: memref<1x1x32xf32, #tpu.memory_space<vmem>>, %arg12: memref<1x1x32xf32, #tpu.memory_space<vmem>>, %arg13: memref<1x32x64xbf16, #tpu.memory_space<vmem>>, %arg14: memref<1x1x64xf32, #tpu.memory_space<vmem>>, %arg15: memref<1x64x32xbf16, #tpu.memory_space<vmem>>, %arg16: memref<1x1x32xf32, #tpu.memory_space<vmem>>, %arg17: memref<1x1x32xf32, #tpu.memory_space<vmem>>, %arg18: memref<1x1x32xf32, #tpu.memory_space<vmem>>, %arg19: memref<16x32xf32, #tpu.memory_space<vmem>>, %arg20: memref<2x8xf32, #tpu.memory_space<vmem>>, %arg21: memref<16x32xf32, #tpu.memory_space<vmem>>) attributes {dimension_semantics = [#tpu.dimension_semantics<arbitrary>], iteration_bounds = array<i64: 2>, scalar_prefetch = 0 : i64, scratch_operands = 1 : i64, tpu.core_type = #tpu.core_type<tc>, window_params = [{pipeline_mode = #tpu.pipeline_mode<synchronous>, transform_indices = @transform_0, window_bounds = array<i64: 16, 32>}, {pipeline_mode = #tpu.pipeline_mode<synchronous>, transform_indices = @transform_1, window_bounds = array<i64: 16, 16>}, {transform_indices = @transform_2, window_bounds = array<i64: 1, 32, 32>}, {transform_indices = @transform_3, window_bounds = array<i64: 1, 1, 32>}, {transform_indices = @transform_4, window_bounds = array<i64: 1, 32, 32>}, {transform_indices = @transform_5, window_bounds = array<i64: 1, 1, 32>}, {transform_indices = @transform_6, window_bounds = array<i64: 1, 32, 32>}, {transform_indices = @transform_7, window_bounds = array<i64: 1, 1, 32>}, {transform_indices = @transform_8, window_bounds = array<i64: 1, 32, 32>}, {transform_indices = @transform_9, window_bounds = array<i64: 1, 1, 32>}, {transform_indices = @transform_10, window_bounds = array<i64: 1, 1, 32>}, {transform_indices = @transform_11, window_bounds = array<i64: 1, 1, 32>}, {transform_indices = @transform_12, window_bounds = array<i64: 1, 32, 64>}, {transform_indices = @transform_13, window_bounds = array<i64: 1, 1, 64>}, {transform_indices = @transform_14, window_bounds = array<i64: 1, 64, 32>}, {transform_indices = @transform_15, window_bounds = array<i64: 1, 1, 32>}, {transform_indices = @transform_16, window_bounds = array<i64: 1, 1, 32>}, {transform_indices = @transform_17, window_bounds = array<i64: 1, 1, 32>}, {pipeline_mode = #tpu.pipeline_mode<synchronous>, transform_indices = @transform_18, window_bounds = array<i64: 16, 32>}, {pipeline_mode = #tpu.pipeline_mode<synchronous>, transform_indices = @transform_19, window_bounds = array<i64: 2, 8>}]} {
    %c0_i32 = arith.constant 0 : i32
    %0 = arith.cmpi eq, %arg0, %c0_i32 : i32
    %1 = arith.extui %0 : i1 to i32
    %c0_i32_0 = arith.constant 0 : i32
    %2 = arith.cmpi ne, %1, %c0_i32_0 : i32
    scf.if %2 {
      %c0_109 = arith.constant 0 : index
      %c0_110 = arith.constant 0 : index
      %220 = vector.load %arg1[%c0_109, %c0_110] : memref<16x32xf32, #tpu.memory_space<vmem>>, vector<16x32xf32>
      %c0_111 = arith.constant 0 : index
      %c0_112 = arith.constant 0 : index
      %221 = vector.load %arg21[%c0_111, %c0_112] : memref<16x32xf32, #tpu.memory_space<vmem>>, vector<16x32xf32>
      tpu.vector_store %arg21[%c0_111, %c0_112], %220 {strides = array<i32>} : memref<16x32xf32, #tpu.memory_space<vmem>>, vector<16x32xf32>,
    } else {
    }
    %c0 = arith.constant 0 : index
    %c0_1 = arith.constant 0 : index
    %3 = vector.load %arg21[%c0, %c0_1] : memref<16x32xf32, #tpu.memory_space<vmem>>, vector<16x32xf32>
    %4 = arith.truncf %3 : vector<16x32xf32> to vector<16x32xbf16>
    %c0_2 = arith.constant 0 : index
    %c0_3 = arith.constant 0 : index
    %5 = vector.load %arg2[%c0_2, %c0_3] : memref<16x16xf32, #tpu.memory_space<vmem>>, vector<16x16xf32>
    %c0_4 = arith.constant 0 : index
    %c0_5 = arith.constant 0 : index
    %c0_6 = arith.constant 0 : index
    %6 = vector.load %arg3[%c0_4, %c0_5, %c0_6] : memref<1x32x32xbf16, #tpu.memory_space<vmem>>, vector<1x32x32xbf16>
    %7 = vector.shape_cast %6 : vector<1x32x32xbf16> to vector<32x32xbf16>
    %cst = arith.constant dense<0.000000e+00> : vector<16x32xf32>
    %8 = tpu.matmul %4, %7, %cst {dimension_numbers = #tpu.dot_dimension_numbers<[1], [0], [0], [1], [0, 0, 1, 1], [], []>} : vector<16x32xbf16>, vector<32x32xbf16>, vector<16x32xf32> -> vector<16x32xf32>
    %c0_7 = arith.constant 0 : index
    %c0_8 = arith.constant 0 : index
    %c0_9 = arith.constant 0 : index
    %9 = vector.load %arg4[%c0_7, %c0_8, %c0_9] : memref<1x1x32xf32, #tpu.memory_space<vmem>>, vector<1x1x32xf32>
    %10 = vector.shape_cast %9 : vector<1x1x32xf32> to vector<1x32xf32>
    %11 = vector.broadcast %10 : vector<1x32xf32> to vector<16x32xf32>
    %12 = arith.addf %8, %11 : vector<16x32xf32>
    %c0_10 = arith.constant 0 : index
    %c0_11 = arith.constant 0 : index
    %c0_12 = arith.constant 0 : index
    %13 = vector.load %arg5[%c0_10, %c0_11, %c0_12] : memref<1x32x32xbf16, #tpu.memory_space<vmem>>, vector<1x32x32xbf16>
    %14 = vector.shape_cast %13 : vector<1x32x32xbf16> to vector<32x32xbf16>
    %cst_13 = arith.constant dense<0.000000e+00> : vector<16x32xf32>
    %15 = tpu.matmul %4, %14, %cst_13 {dimension_numbers = #tpu.dot_dimension_numbers<[1], [0], [0], [1], [0, 0, 1, 1], [], []>} : vector<16x32xbf16>, vector<32x32xbf16>, vector<16x32xf32> -> vector<16x32xf32>
    %c0_14 = arith.constant 0 : index
    %c0_15 = arith.constant 0 : index
    %c0_16 = arith.constant 0 : index
    %16 = vector.load %arg6[%c0_14, %c0_15, %c0_16] : memref<1x1x32xf32, #tpu.memory_space<vmem>>, vector<1x1x32xf32>
    %17 = vector.shape_cast %16 : vector<1x1x32xf32> to vector<1x32xf32>
    %18 = vector.broadcast %17 : vector<1x32xf32> to vector<16x32xf32>
    %19 = arith.addf %15, %18 : vector<16x32xf32>
    %c0_17 = arith.constant 0 : index
    %c0_18 = arith.constant 0 : index
    %c0_19 = arith.constant 0 : index
    %20 = vector.load %arg7[%c0_17, %c0_18, %c0_19] : memref<1x32x32xbf16, #tpu.memory_space<vmem>>, vector<1x32x32xbf16>
    %21 = vector.shape_cast %20 : vector<1x32x32xbf16> to vector<32x32xbf16>
    %cst_20 = arith.constant dense<0.000000e+00> : vector<16x32xf32>
    %22 = tpu.matmul %4, %21, %cst_20 {dimension_numbers = #tpu.dot_dimension_numbers<[1], [0], [0], [1], [0, 0, 1, 1], [], []>} : vector<16x32xbf16>, vector<32x32xbf16>, vector<16x32xf32> -> vector<16x32xf32>
    %c0_21 = arith.constant 0 : index
    %c0_22 = arith.constant 0 : index
    %c0_23 = arith.constant 0 : index
    %23 = vector.load %arg8[%c0_21, %c0_22, %c0_23] : memref<1x1x32xf32, #tpu.memory_space<vmem>>, vector<1x1x32xf32>
    %24 = vector.shape_cast %23 : vector<1x1x32xf32> to vector<1x32xf32>
    %25 = vector.broadcast %24 : vector<1x32xf32> to vector<16x32xf32>
    %26 = arith.addf %22, %25 : vector<16x32xf32>
    %cst_24 = arith.constant 0.000000e+00 : f32
    %27 = vector.broadcast %cst_24 : f32 to vector<16x32xf32>
    %cst_25 = arith.constant 0.000000e+00 : f32
    %28 = vector.broadcast %cst_25 : f32 to vector<16x16xf32>
    %29 = vector.extract_strided_slice %12 {offsets = [0, 0], sizes = [16, 8], strides = [1, 1]} : vector<16x32xf32> to vector<16x8xf32>
    %30 = vector.extract_strided_slice %19 {offsets = [0, 0], sizes = [16, 8], strides = [1, 1]} : vector<16x32xf32> to vector<16x8xf32>
    %31 = vector.extract_strided_slice %26 {offsets = [0, 0], sizes = [16, 8], strides = [1, 1]} : vector<16x32xf32> to vector<16x8xf32>
    "tpu.trace_start"() <{level = 10 : i32, message = "qd,kd->qk"}> : () -> ()
    %cst_26 = arith.constant dense<0.000000e+00> : vector<16x16xf32>
    %32 = tpu.matmul %29, %30, %cst_26 {dimension_numbers = #tpu.dot_dimension_numbers<[1], [1], [0], [0], [0, 0, 1, 0], [], []>} : vector<16x8xf32>, vector<16x8xf32>, vector<16x16xf32> -> vector<16x16xf32>
    "tpu.trace_stop"() : () -> ()
    %cst_27 = arith.constant 0.353553385 : f32
    %33 = vector.broadcast %cst_27 : f32 to vector<16x16xf32>
    %34 = arith.mulf %32, %33 : vector<16x16xf32>
    %35 = arith.addf %34, %5 : vector<16x16xf32>
    %cst_28 = arith.constant dense<0xFF800000> : vector<16xf32>
    %36 = vector.multi_reduction <maximumf>, %35, %cst_28 [1] : vector<16x16xf32> to vector<16xf32>
    %37 = vector.shape_cast %36 : vector<16xf32> to vector<16x1xf32>
    %38 = vector.broadcast %37 : vector<16x1xf32> to vector<16x16xf32>
    %39 = arith.subf %35, %38 : vector<16x16xf32>
    %40 = math.exp %39 : vector<16x16xf32>
    %cst_29 = arith.constant dense<0.000000e+00> : vector<16xf32>
    %41 = vector.multi_reduction <add>, %40, %cst_29 [1] : vector<16x16xf32> to vector<16xf32>
    %42 = vector.shape_cast %41 : vector<16xf32> to vector<16x1xf32>
    %43 = tpu.reciprocal %42 {approx = true} : vector<16x1xf32> -> vector<16x1xf32>
    %44 = vector.broadcast %43 : vector<16x1xf32> to vector<16x16xf32>
    %45 = arith.mulf %40, %44 : vector<16x16xf32>
    %46 = arith.addf %28, %45 : vector<16x16xf32>
    %cst_30 = arith.constant dense<0.000000e+00> : vector<16x8xf32>
    %47 = tpu.matmul %45, %31, %cst_30 {dimension_numbers = #tpu.dot_dimension_numbers<[1], [0], [0], [1], [0, 0, 1, 1], [], []>} : vector<16x16xf32>, vector<16x8xf32>, vector<16x8xf32> -> vector<16x8xf32>
    %48 = arith.truncf %47 : vector<16x8xf32> to vector<16x8xbf16>
    %c0_31 = arith.constant 0 : index
    %c0_32 = arith.constant 0 : index
    %c0_33 = arith.constant 0 : index
    %49 = vector.load %arg9[%c0_31, %c0_32, %c0_33] : memref<1x32x32xbf16, #tpu.memory_space<vmem>>, vector<1x8x32xbf16>
    %50 = vector.shape_cast %49 : vector<1x8x32xbf16> to vector<8x32xbf16>
    %cst_34 = arith.constant dense<0.000000e+00> : vector<16x32xf32>
    %51 = tpu.matmul %48, %50, %cst_34 {dimension_numbers = #tpu.dot_dimension_numbers<[1], [0], [0], [1], [0, 0, 1, 1], [], []>} : vector<16x8xbf16>, vector<8x32xbf16>, vector<16x32xf32> -> vector<16x32xf32>
    %52 = arith.addf %27, %51 : vector<16x32xf32>
    %53 = vector.extract_strided_slice %12 {offsets = [0, 8], sizes = [16, 8], strides = [1, 1]} : vector<16x32xf32> to vector<16x8xf32>
    %54 = vector.extract_strided_slice %19 {offsets = [0, 8], sizes = [16, 8], strides = [1, 1]} : vector<16x32xf32> to vector<16x8xf32>
    %55 = vector.extract_strided_slice %26 {offsets = [0, 8], sizes = [16, 8], strides = [1, 1]} : vector<16x32xf32> to vector<16x8xf32>
    "tpu.trace_start"() <{level = 10 : i32, message = "qd,kd->qk"}> : () -> ()
    %cst_35 = arith.constant dense<0.000000e+00> : vector<16x16xf32>
    %56 = tpu.matmul %53, %54, %cst_35 {dimension_numbers = #tpu.dot_dimension_numbers<[1], [1], [0], [0], [0, 0, 1, 0], [], []>} : vector<16x8xf32>, vector<16x8xf32>, vector<16x16xf32> -> vector<16x16xf32>
    "tpu.trace_stop"() : () -> ()
    %cst_36 = arith.constant 0.353553385 : f32
    %57 = vector.broadcast %cst_36 : f32 to vector<16x16xf32>
    %58 = arith.mulf %56, %57 : vector<16x16xf32>
    %59 = arith.addf %58, %5 : vector<16x16xf32>
    %cst_37 = arith.constant dense<0xFF800000> : vector<16xf32>
    %60 = vector.multi_reduction <maximumf>, %59, %cst_37 [1] : vector<16x16xf32> to vector<16xf32>
    %61 = vector.shape_cast %60 : vector<16xf32> to vector<16x1xf32>
    %62 = vector.broadcast %61 : vector<16x1xf32> to vector<16x16xf32>
    %63 = arith.subf %59, %62 : vector<16x16xf32>
    %64 = math.exp %63 : vector<16x16xf32>
    %cst_38 = arith.constant dense<0.000000e+00> : vector<16xf32>
    %65 = vector.multi_reduction <add>, %64, %cst_38 [1] : vector<16x16xf32> to vector<16xf32>
    %66 = vector.shape_cast %65 : vector<16xf32> to vector<16x1xf32>
    %67 = tpu.reciprocal %66 {approx = true} : vector<16x1xf32> -> vector<16x1xf32>
    %68 = vector.broadcast %67 : vector<16x1xf32> to vector<16x16xf32>
    %69 = arith.mulf %64, %68 : vector<16x16xf32>
    %70 = arith.addf %46, %69 : vector<16x16xf32>
    %cst_39 = arith.constant dense<0.000000e+00> : vector<16x8xf32>
    %71 = tpu.matmul %69, %55, %cst_39 {dimension_numbers = #tpu.dot_dimension_numbers<[1], [0], [0], [1], [0, 0, 1, 1], [], []>} : vector<16x16xf32>, vector<16x8xf32>, vector<16x8xf32> -> vector<16x8xf32>
    %72 = arith.truncf %71 : vector<16x8xf32> to vector<16x8xbf16>
    %c0_40 = arith.constant 0 : index
    %c8 = arith.constant 8 : index
    %c0_41 = arith.constant 0 : index
    %73 = vector.load %arg9[%c0_40, %c8, %c0_41] : memref<1x32x32xbf16, #tpu.memory_space<vmem>>, vector<1x8x32xbf16>
    %74 = vector.shape_cast %73 : vector<1x8x32xbf16> to vector<8x32xbf16>
    %cst_42 = arith.constant dense<0.000000e+00> : vector<16x32xf32>
    %75 = tpu.matmul %72, %74, %cst_42 {dimension_numbers = #tpu.dot_dimension_numbers<[1], [0], [0], [1], [0, 0, 1, 1], [], []>} : vector<16x8xbf16>, vector<8x32xbf16>, vector<16x32xf32> -> vector<16x32xf32>
    %76 = arith.addf %52, %75 : vector<16x32xf32>
    %77 = vector.extract_strided_slice %12 {offsets = [0, 16], sizes = [16, 8], strides = [1, 1]} : vector<16x32xf32> to vector<16x8xf32>
    %78 = vector.extract_strided_slice %19 {offsets = [0, 16], sizes = [16, 8], strides = [1, 1]} : vector<16x32xf32> to vector<16x8xf32>
    %79 = vector.extract_strided_slice %26 {offsets = [0, 16], sizes = [16, 8], strides = [1, 1]} : vector<16x32xf32> to vector<16x8xf32>
    "tpu.trace_start"() <{level = 10 : i32, message = "qd,kd->qk"}> : () -> ()
    %cst_43 = arith.constant dense<0.000000e+00> : vector<16x16xf32>
    %80 = tpu.matmul %77, %78, %cst_43 {dimension_numbers = #tpu.dot_dimension_numbers<[1], [1], [0], [0], [0, 0, 1, 0], [], []>} : vector<16x8xf32>, vector<16x8xf32>, vector<16x16xf32> -> vector<16x16xf32>
    "tpu.trace_stop"() : () -> ()
    %cst_44 = arith.constant 0.353553385 : f32
    %81 = vector.broadcast %cst_44 : f32 to vector<16x16xf32>
    %82 = arith.mulf %80, %81 : vector<16x16xf32>
    %83 = arith.addf %82, %5 : vector<16x16xf32>
    %cst_45 = arith.constant dense<0xFF800000> : vector<16xf32>
    %84 = vector.multi_reduction <maximumf>, %83, %cst_45 [1] : vector<16x16xf32> to vector<16xf32>
    %85 = vector.shape_cast %84 : vector<16xf32> to vector<16x1xf32>
    %86 = vector.broadcast %85 : vector<16x1xf32> to vector<16x16xf32>
    %87 = arith.subf %83, %86 : vector<16x16xf32>
    %88 = math.exp %87 : vector<16x16xf32>
    %cst_46 = arith.constant dense<0.000000e+00> : vector<16xf32>
    %89 = vector.multi_reduction <add>, %88, %cst_46 [1] : vector<16x16xf32> to vector<16xf32>
    %90 = vector.shape_cast %89 : vector<16xf32> to vector<16x1xf32>
    %91 = tpu.reciprocal %90 {approx = true} : vector<16x1xf32> -> vector<16x1xf32>
    %92 = vector.broadcast %91 : vector<16x1xf32> to vector<16x16xf32>
    %93 = arith.mulf %88, %92 : vector<16x16xf32>
    %94 = arith.addf %70, %93 : vector<16x16xf32>
    %cst_47 = arith.constant dense<0.000000e+00> : vector<16x8xf32>
    %95 = tpu.matmul %93, %79, %cst_47 {dimension_numbers = #tpu.dot_dimension_numbers<[1], [0], [0], [1], [0, 0, 1, 1], [], []>} : vector<16x16xf32>, vector<16x8xf32>, vector<16x8xf32> -> vector<16x8xf32>
    %96 = arith.truncf %95 : vector<16x8xf32> to vector<16x8xbf16>
    %c0_48 = arith.constant 0 : index
    %c16 = arith.constant 16 : index
    %c0_49 = arith.constant 0 : index
    %97 = vector.load %arg9[%c0_48, %c16, %c0_49] : memref<1x32x32xbf16, #tpu.memory_space<vmem>>, vector<1x8x32xbf16>
    %98 = vector.shape_cast %97 : vector<1x8x32xbf16> to vector<8x32xbf16>
    %cst_50 = arith.constant dense<0.000000e+00> : vector<16x32xf32>
    %99 = tpu.matmul %96, %98, %cst_50 {dimension_numbers = #tpu.dot_dimension_numbers<[1], [0], [0], [1], [0, 0, 1, 1], [], []>} : vector<16x8xbf16>, vector<8x32xbf16>, vector<16x32xf32> -> vector<16x32xf32>
    %100 = arith.addf %76, %99 : vector<16x32xf32>
    %101 = vector.extract_strided_slice %12 {offsets = [0, 24], sizes = [16, 8], strides = [1, 1]} : vector<16x32xf32> to vector<16x8xf32>
    %102 = vector.extract_strided_slice %19 {offsets = [0, 24], sizes = [16, 8], strides = [1, 1]} : vector<16x32xf32> to vector<16x8xf32>
    %103 = vector.extract_strided_slice %26 {offsets = [0, 24], sizes = [16, 8], strides = [1, 1]} : vector<16x32xf32> to vector<16x8xf32>
    "tpu.trace_start"() <{level = 10 : i32, message = "qd,kd->qk"}> : () -> ()
    %cst_51 = arith.constant dense<0.000000e+00> : vector<16x16xf32>
    %104 = tpu.matmul %101, %102, %cst_51 {dimension_numbers = #tpu.dot_dimension_numbers<[1], [1], [0], [0], [0, 0, 1, 0], [], []>} : vector<16x8xf32>, vector<16x8xf32>, vector<16x16xf32> -> vector<16x16xf32>
    "tpu.trace_stop"() : () -> ()
    %cst_52 = arith.constant 0.353553385 : f32
    %105 = vector.broadcast %cst_52 : f32 to vector<16x16xf32>
    %106 = arith.mulf %104, %105 : vector<16x16xf32>
    %107 = arith.addf %106, %5 : vector<16x16xf32>
    %cst_53 = arith.constant dense<0xFF800000> : vector<16xf32>
    %108 = vector.multi_reduction <maximumf>, %107, %cst_53 [1] : vector<16x16xf32> to vector<16xf32>
    %109 = vector.shape_cast %108 : vector<16xf32> to vector<16x1xf32>
    %110 = vector.broadcast %109 : vector<16x1xf32> to vector<16x16xf32>
    %111 = arith.subf %107, %110 : vector<16x16xf32>
    %112 = math.exp %111 : vector<16x16xf32>
    %cst_54 = arith.constant dense<0.000000e+00> : vector<16xf32>
    %113 = vector.multi_reduction <add>, %112, %cst_54 [1] : vector<16x16xf32> to vector<16xf32>
    %114 = vector.shape_cast %113 : vector<16xf32> to vector<16x1xf32>
    %115 = tpu.reciprocal %114 {approx = true} : vector<16x1xf32> -> vector<16x1xf32>
    %116 = vector.broadcast %115 : vector<16x1xf32> to vector<16x16xf32>
    %117 = arith.mulf %112, %116 : vector<16x16xf32>
    %118 = arith.addf %94, %117 : vector<16x16xf32>
    %cst_55 = arith.constant dense<0.000000e+00> : vector<16x8xf32>
    %119 = tpu.matmul %117, %103, %cst_55 {dimension_numbers = #tpu.dot_dimension_numbers<[1], [0], [0], [1], [0, 0, 1, 1], [], []>} : vector<16x16xf32>, vector<16x8xf32>, vector<16x8xf32> -> vector<16x8xf32>
    %120 = arith.truncf %119 : vector<16x8xf32> to vector<16x8xbf16>
    %c0_56 = arith.constant 0 : index
    %c24 = arith.constant 24 : index
    %c0_57 = arith.constant 0 : index
    %121 = vector.load %arg9[%c0_56, %c24, %c0_57] : memref<1x32x32xbf16, #tpu.memory_space<vmem>>, vector<1x8x32xbf16>
    %122 = vector.shape_cast %121 : vector<1x8x32xbf16> to vector<8x32xbf16>
    %cst_58 = arith.constant dense<0.000000e+00> : vector<16x32xf32>
    %123 = tpu.matmul %120, %122, %cst_58 {dimension_numbers = #tpu.dot_dimension_numbers<[1], [0], [0], [1], [0, 0, 1, 1], [], []>} : vector<16x8xbf16>, vector<8x32xbf16>, vector<16x32xf32> -> vector<16x32xf32>
    %124 = arith.addf %100, %123 : vector<16x32xf32>
    %c0_59 = arith.constant 0 : index
    %c0_60 = arith.constant 0 : index
    %c0_61 = arith.constant 0 : index
    %125 = vector.load %arg10[%c0_59, %c0_60, %c0_61] : memref<1x1x32xf32, #tpu.memory_space<vmem>>, vector<1x1x32xf32>
    %126 = vector.shape_cast %125 : vector<1x1x32xf32> to vector<1x32xf32>
    %127 = vector.broadcast %126 : vector<1x32xf32> to vector<16x32xf32>
    %128 = arith.addf %124, %127 : vector<16x32xf32>
    %129 = arith.addf %3, %128 : vector<16x32xf32>
    %c0_62 = arith.constant 0 : index
    %c0_63 = arith.constant 0 : index
    %c0_64 = arith.constant 0 : index
    %130 = vector.load %arg11[%c0_62, %c0_63, %c0_64] : memref<1x1x32xf32, #tpu.memory_space<vmem>>, vector<1x1x32xf32>
    %131 = vector.shape_cast %130 : vector<1x1x32xf32> to vector<1x32xf32>
    %c0_65 = arith.constant 0 : index
    %c0_66 = arith.constant 0 : index
    %c0_67 = arith.constant 0 : index
    %132 = vector.load %arg12[%c0_65, %c0_66, %c0_67] : memref<1x1x32xf32, #tpu.memory_space<vmem>>, vector<1x1x32xf32>
    %133 = vector.shape_cast %132 : vector<1x1x32xf32> to vector<1x32xf32>
    %cst_68 = arith.constant dense<0.000000e+00> : vector<16xf32>
    %134 = vector.multi_reduction <add>, %129, %cst_68 [1] : vector<16x32xf32> to vector<16xf32>
    %135 = vector.shape_cast %134 : vector<16xf32> to vector<16x1xf32>
    %cst_69 = arith.constant 3.200000e+01 : f32
    %136 = vector.broadcast %cst_69 : f32 to vector<16x1xf32>
    %137 = arith.divf %135, %136 : vector<16x1xf32>
    %138 = vector.broadcast %137 : vector<16x1xf32> to vector<16x32xf32>
    %139 = arith.subf %129, %138 : vector<16x32xf32>
    %140 = arith.mulf %139, %139 : vector<16x32xf32>
    %cst_70 = arith.constant dense<0.000000e+00> : vector<16xf32>
    %141 = vector.multi_reduction <add>, %140, %cst_70 [1] : vector<16x32xf32> to vector<16xf32>
    %142 = vector.shape_cast %141 : vector<16xf32> to vector<16x1xf32>
    %cst_71 = arith.constant 3.200000e+01 : f32
    %143 = vector.broadcast %cst_71 : f32 to vector<16x1xf32>
    %144 = arith.divf %142, %143 : vector<16x1xf32>
    %145 = vector.broadcast %137 : vector<16x1xf32> to vector<16x32xf32>
    %146 = arith.subf %129, %145 : vector<16x32xf32>
    %cst_72 = arith.constant 9.99999996E-13 : f32
    %147 = vector.broadcast %cst_72 : f32 to vector<16x1xf32>
    %148 = arith.addf %144, %147 : vector<16x1xf32>
    %149 = math.rsqrt %148 : vector<16x1xf32>
    %150 = vector.broadcast %149 : vector<16x1xf32> to vector<16x32xf32>
    %151 = arith.mulf %146, %150 : vector<16x32xf32>
    %152 = vector.broadcast %131 : vector<1x32xf32> to vector<16x32xf32>
    %153 = arith.mulf %151, %152 : vector<16x32xf32>
    %154 = vector.broadcast %133 : vector<1x32xf32> to vector<16x32xf32>
    %155 = arith.addf %153, %154 : vector<16x32xf32>
    %156 = arith.truncf %155 : vector<16x32xf32> to vector<16x32xbf16>
    %c0_73 = arith.constant 0 : index
    %c0_74 = arith.constant 0 : index
    %c0_75 = arith.constant 0 : index
    %157 = vector.load %arg13[%c0_73, %c0_74, %c0_75] : memref<1x32x64xbf16, #tpu.memory_space<vmem>>, vector<1x32x64xbf16>
    %158 = vector.shape_cast %157 : vector<1x32x64xbf16> to vector<32x64xbf16>
    %cst_76 = arith.constant dense<0.000000e+00> : vector<16x64xf32>
    %159 = tpu.matmul %156, %158, %cst_76 {dimension_numbers = #tpu.dot_dimension_numbers<[1], [0], [0], [1], [0, 0, 1, 1], [], []>} : vector<16x32xbf16>, vector<32x64xbf16>, vector<16x64xf32> -> vector<16x64xf32>
    %c0_77 = arith.constant 0 : index
    %c0_78 = arith.constant 0 : index
    %c0_79 = arith.constant 0 : index
    %160 = vector.load %arg14[%c0_77, %c0_78, %c0_79] : memref<1x1x64xf32, #tpu.memory_space<vmem>>, vector<1x1x64xf32>
    %161 = vector.shape_cast %160 : vector<1x1x64xf32> to vector<1x64xf32>
    %162 = vector.broadcast %161 : vector<1x64xf32> to vector<16x64xf32>
    %163 = arith.addf %159, %162 : vector<16x64xf32>
    %cst_80 = arith.constant 5.000000e-01 : f32
    %164 = vector.broadcast %cst_80 : f32 to vector<16x64xf32>
    %165 = arith.mulf %164, %163 : vector<16x64xf32>
    %cst_81 = arith.constant 4.471500e-02 : f32
    %166 = vector.broadcast %cst_81 : f32 to vector<16x64xf32>
    %167 = arith.mulf %166, %163 : vector<16x64xf32>
    %168 = arith.mulf %167, %163 : vector<16x64xf32>
    %169 = arith.mulf %168, %163 : vector<16x64xf32>
    %170 = arith.addf %163, %169 : vector<16x64xf32>
    %cst_82 = arith.constant 0.797884583 : f32
    %171 = vector.broadcast %cst_82 : f32 to vector<16x64xf32>
    %172 = arith.mulf %171, %170 : vector<16x64xf32>
    %173 = math.tanh %172 : vector<16x64xf32>
    %cst_83 = arith.constant 1.000000e+00 : f32
    %174 = vector.broadcast %cst_83 : f32 to vector<16x64xf32>
    %175 = arith.addf %174, %173 : vector<16x64xf32>
    %176 = arith.mulf %165, %175 : vector<16x64xf32>
    %177 = arith.truncf %176 : vector<16x64xf32> to vector<16x64xbf16>
    %c0_84 = arith.constant 0 : index
    %c0_85 = arith.constant 0 : index
    %c0_86 = arith.constant 0 : index
    %178 = vector.load %arg15[%c0_84, %c0_85, %c0_86] : memref<1x64x32xbf16, #tpu.memory_space<vmem>>, vector<1x64x32xbf16>
    %179 = vector.shape_cast %178 : vector<1x64x32xbf16> to vector<64x32xbf16>
    %cst_87 = arith.constant dense<0.000000e+00> : vector<16x32xf32>
    %180 = tpu.matmul %177, %179, %cst_87 {dimension_numbers = #tpu.dot_dimension_numbers<[1], [0], [0], [1], [0, 0, 1, 1], [], []>} : vector<16x64xbf16>, vector<64x32xbf16>, vector<16x32xf32> -> vector<16x32xf32>
    %c0_88 = arith.constant 0 : index
    %c0_89 = arith.constant 0 : index
    %c0_90 = arith.constant 0 : index
    %181 = vector.load %arg16[%c0_88, %c0_89, %c0_90] : memref<1x1x32xf32, #tpu.memory_space<vmem>>, vector<1x1x32xf32>
    %182 = vector.shape_cast %181 : vector<1x1x32xf32> to vector<1x32xf32>
    %183 = vector.broadcast %182 : vector<1x32xf32> to vector<16x32xf32>
    %184 = arith.addf %180, %183 : vector<16x32xf32>
    %185 = arith.addf %155, %184 : vector<16x32xf32>
    %c0_91 = arith.constant 0 : index
    %c0_92 = arith.constant 0 : index
    %c0_93 = arith.constant 0 : index
    %186 = vector.load %arg17[%c0_91, %c0_92, %c0_93] : memref<1x1x32xf32, #tpu.memory_space<vmem>>, vector<1x1x32xf32>
    %187 = vector.shape_cast %186 : vector<1x1x32xf32> to vector<1x32xf32>
    %c0_94 = arith.constant 0 : index
    %c0_95 = arith.constant 0 : index
    %c0_96 = arith.constant 0 : index
    %188 = vector.load %arg18[%c0_94, %c0_95, %c0_96] : memref<1x1x32xf32, #tpu.memory_space<vmem>>, vector<1x1x32xf32>
    %189 = vector.shape_cast %188 : vector<1x1x32xf32> to vector<1x32xf32>
    %cst_97 = arith.constant dense<0.000000e+00> : vector<16xf32>
    %190 = vector.multi_reduction <add>, %185, %cst_97 [1] : vector<16x32xf32> to vector<16xf32>
    %191 = vector.shape_cast %190 : vector<16xf32> to vector<16x1xf32>
    %cst_98 = arith.constant 3.200000e+01 : f32
    %192 = vector.broadcast %cst_98 : f32 to vector<16x1xf32>
    %193 = arith.divf %191, %192 : vector<16x1xf32>
    %194 = vector.broadcast %193 : vector<16x1xf32> to vector<16x32xf32>
    %195 = arith.subf %185, %194 : vector<16x32xf32>
    %196 = arith.mulf %195, %195 : vector<16x32xf32>
    %cst_99 = arith.constant dense<0.000000e+00> : vector<16xf32>
    %197 = vector.multi_reduction <add>, %196, %cst_99 [1] : vector<16x32xf32> to vector<16xf32>
    %198 = vector.shape_cast %197 : vector<16xf32> to vector<16x1xf32>
    %cst_100 = arith.constant 3.200000e+01 : f32
    %199 = vector.broadcast %cst_100 : f32 to vector<16x1xf32>
    %200 = arith.divf %198, %199 : vector<16x1xf32>
    %201 = vector.broadcast %193 : vector<16x1xf32> to vector<16x32xf32>
    %202 = arith.subf %185, %201 : vector<16x32xf32>
    %cst_101 = arith.constant 9.99999996E-13 : f32
    %203 = vector.broadcast %cst_101 : f32 to vector<16x1xf32>
    %204 = arith.addf %200, %203 : vector<16x1xf32>
    %205 = math.rsqrt %204 : vector<16x1xf32>
    %206 = vector.broadcast %205 : vector<16x1xf32> to vector<16x32xf32>
    %207 = arith.mulf %202, %206 : vector<16x32xf32>
    %208 = vector.broadcast %187 : vector<1x32xf32> to vector<16x32xf32>
    %209 = arith.mulf %207, %208 : vector<16x32xf32>
    %210 = vector.broadcast %189 : vector<1x32xf32> to vector<16x32xf32>
    %211 = arith.addf %209, %210 : vector<16x32xf32>
    %c0_102 = arith.constant 0 : index
    %c0_103 = arith.constant 0 : index
    %212 = vector.load %arg21[%c0_102, %c0_103] : memref<16x32xf32, #tpu.memory_space<vmem>>, vector<16x32xf32>
    tpu.vector_store %arg21[%c0_102, %c0_103], %211 {strides = array<i32>} : memref<16x32xf32, #tpu.memory_space<vmem>>, vector<16x32xf32>,
    %c0_104 = arith.constant 0 : index
    %c0_105 = arith.constant 0 : index
    %213 = vector.load %arg19[%c0_104, %c0_105] : memref<16x32xf32, #tpu.memory_space<vmem>>, vector<16x32xf32>
    tpu.vector_store %arg19[%c0_104, %c0_105], %211 {strides = array<i32>} : memref<16x32xf32, #tpu.memory_space<vmem>>, vector<16x32xf32>,
    %cst_106 = arith.constant 2.500000e-01 : f32
    %214 = vector.broadcast %cst_106 : f32 to vector<16x16xf32>
    %215 = arith.mulf %118, %214 : vector<16x16xf32>
    %216 = vector.extract_strided_slice %215 {offsets = [0, 0], sizes = [1, 8], strides = [1, 1]} : vector<16x16xf32> to vector<1x8xf32>
    %217 = vector.extract_strided_slice %215 {offsets = [8, 8], sizes = [1, 8], strides = [1, 1]} : vector<16x16xf32> to vector<1x8xf32>
    %218 = tpu.concatenate %216, %217 in 0 : vector<1x8xf32>, vector<1x8xf32> -> vector<2x8xf32>
    %c0_107 = arith.constant 0 : index
    %c0_108 = arith.constant 0 : index
    %219 = vector.load %arg20[%c0_107, %c0_108] : memref<2x8xf32, #tpu.memory_space<vmem>>, vector<2x8xf32>
    tpu.vector_store %arg20[%c0_107, %c0_108], %218 {strides = array<i32>} : memref<2x8xf32, #tpu.memory_space<vmem>>, vector<2x8xf32>,
    return
  }
  func.func @transform_0(%arg0: i32) -> (i32, i32) {
    %c0_i32 = arith.constant 0 : i32
    %c0_i32_0 = arith.constant 0 : i32
    %c0_i32_1 = arith.constant 0 : i32
    return %c0_i32, %c0_i32_0 : i32, i32
  }
  func.func @transform_1(%arg0: i32) -> (i32, i32) {
    %c0_i32 = arith.constant 0 : i32
    %c0_i32_0 = arith.constant 0 : i32
    %c0_i32_1 = arith.constant 0 : i32
    return %c0_i32, %c0_i32_0 : i32, i32
  }
  func.func @transform_2(%arg0: i32) -> (i32, i32, i32) {
    %c0_i32 = arith.constant 0 : i32
    %c0_i32_0 = arith.constant 0 : i32
    %c0_i32_1 = arith.constant 0 : i32
    return %arg0, %c0_i32, %c0_i32_0 : i32, i32, i32
  }
  func.func @transform_3(%arg0: i32) -> (i32, i32, i32) {
    %c0_i32 = arith.constant 0 : i32
    %c0_i32_0 = arith.constant 0 : i32
    %c0_i32_1 = arith.constant 0 : i32
    return %arg0, %c0_i32, %c0_i32_0 : i32, i32, i32
  }
  func.func @transform_4(%arg0: i32) -> (i32, i32, i32) {
    %c0_i32 = arith.constant 0 : i32
    %c0_i32_0 = arith.constant 0 : i32
    %c0_i32_1 = arith.constant 0 : i32
    return %arg0, %c0_i32, %c0_i32_0 : i32, i32, i32
  }
  func.func @transform_5(%arg0: i32) -> (i32, i32, i32) {
    %c0_i32 = arith.constant 0 : i32
    %c0_i32_0 = arith.constant 0 : i32
    %c0_i32_1 = arith.constant 0 : i32
    return %arg0, %c0_i32, %c0_i32_0 : i32, i32, i32
  }
  func.func @transform_6(%arg0: i32) -> (i32, i32, i32) {
    %c0_i32 = arith.constant 0 : i32
    %c0_i32_0 = arith.constant 0 : i32
    %c0_i32_1 = arith.constant 0 : i32
    return %arg0, %c0_i32, %c0_i32_0 : i32, i32, i32
  }
  func.func @transform_7(%arg0: i32) -> (i32, i32, i32) {
    %c0_i32 = arith.constant 0 : i32
    %c0_i32_0 = arith.constant 0 : i32
    %c0_i32_1 = arith.constant 0 : i32
    return %arg0, %c0_i32, %c0_i32_0 : i32, i32, i32
  }
  func.func @transform_8(%arg0: i32) -> (i32, i32, i32) {
    %c0_i32 = arith.constant 0 : i32
    %c0_i32_0 = arith.constant 0 : i32
    %c0_i32_1 = arith.constant 0 : i32
    return %arg0, %c0_i32, %c0_i32_0 : i32, i32, i32
  }
  func.func @transform_9(%arg0: i32) -> (i32, i32, i32) {
    %c0_i32 = arith.constant 0 : i32
    %c0_i32_0 = arith.constant 0 : i32
    %c0_i32_1 = arith.constant 0 : i32
    return %arg0, %c0_i32, %c0_i32_0 : i32, i32, i32
  }
  func.func @transform_10(%arg0: i32) -> (i32, i32, i32) {
    %c0_i32 = arith.constant 0 : i32
    %c0_i32_0 = arith.constant 0 : i32
    %c0_i32_1 = arith.constant 0 : i32
    return %arg0, %c0_i32, %c0_i32_0 : i32, i32, i32
  }
  func.func @transform_11(%arg0: i32) -> (i32, i32, i32) {
    %c0_i32 = arith.constant 0 : i32
    %c0_i32_0 = arith.constant 0 : i32
    %c0_i32_1 = arith.constant 0 : i32
    return %arg0, %c0_i32, %c0_i32_0 : i32, i32, i32
  }
  func.func @transform_12(%arg0: i32) -> (i32, i32, i32) {
    %c0_i32 = arith.constant 0 : i32
    %c0_i32_0 = arith.constant 0 : i32
    %c0_i32_1 = arith.constant 0 : i32
    return %arg0, %c0_i32, %c0_i32_0 : i32, i32, i32
  }
  func.func @transform_13(%arg0: i32) -> (i32, i32, i32) {
    %c0_i32 = arith.constant 0 : i32
    %c0_i32_0 = arith.constant 0 : i32
    %c0_i32_1 = arith.constant 0 : i32
    return %arg0, %c0_i32, %c0_i32_0 : i32, i32, i32
  }
  func.func @transform_14(%arg0: i32) -> (i32, i32, i32) {
    %c0_i32 = arith.constant 0 : i32
    %c0_i32_0 = arith.constant 0 : i32
    %c0_i32_1 = arith.constant 0 : i32
    return %arg0, %c0_i32, %c0_i32_0 : i32, i32, i32
  }
  func.func @transform_15(%arg0: i32) -> (i32, i32, i32) {
    %c0_i32 = arith.constant 0 : i32
    %c0_i32_0 = arith.constant 0 : i32
    %c0_i32_1 = arith.constant 0 : i32
    return %arg0, %c0_i32, %c0_i32_0 : i32, i32, i32
  }
  func.func @transform_16(%arg0: i32) -> (i32, i32, i32) {
    %c0_i32 = arith.constant 0 : i32
    %c0_i32_0 = arith.constant 0 : i32
    %c0_i32_1 = arith.constant 0 : i32
    return %arg0, %c0_i32, %c0_i32_0 : i32, i32, i32
  }
  func.func @transform_17(%arg0: i32) -> (i32, i32, i32) {
    %c0_i32 = arith.constant 0 : i32
    %c0_i32_0 = arith.constant 0 : i32
    %c0_i32_1 = arith.constant 0 : i32
    return %arg0, %c0_i32, %c0_i32_0 : i32, i32, i32
  }
  func.func @transform_18(%arg0: i32) -> (i32, i32) {
    %c0_i32 = arith.constant 0 : i32
    %c0_i32_0 = arith.constant 0 : i32
    %c0_i32_1 = arith.constant 0 : i32
    return %c0_i32, %c0_i32_0 : i32, i32
  }
  func.func @transform_19(%arg0: i32) -> (i32, i32) {
    %c0_i32 = arith.constant 0 : i32
    %c0_i32_0 = arith.constant 0 : i32
    %c0_i32_1 = arith.constant 0 : i32
    return %c0_i32, %c0_i32_0 : i32, i32
  }
}

</mosaic_0001>

<bundles_post_ra>
// kernel: tpu_custom_call.1
= control target key start
LH: loop header
LB: loop body
LE: loop exit
PB: predicated region body
PF: predicated region fallthrough
CT: control target
= control target key end

     0   :  { %s4105_s0 = inlined_call_operand.hbm [shape: f32[16,32], index: 0, kind: input, shape index: {}]   ;;  %s4106_s1 = inlined_call_operand.hbm [shape: f32[16,16], index: 1, kind: input, shape index: {}]   ;;  %s4107_s2 = inlined_call_operand.vmem [shape: bf16[2,32,32], index: 2, kind: input, shape index: {}]   ;;  %s4108_s3 = inlined_call_operand.vmem [shape: f32[2,1,32], index: 3, kind: input, shape index: {}]   ;;  %s4109_s4 = inlined_call_operand.vmem [shape: bf16[2,32,32], index: 4, kind: input, shape index: {}]   ;;  %s4110_s5 = inlined_call_operand.vmem [shape: f32[2,1,32], index: 5, kind: input, shape index: {}]   ;;  %s4111_s6 = inlined_call_operand.vmem [shape: bf16[2,32,32], index: 6, kind: input, shape index: {}]   ;;  %s4112_s7 = inlined_call_operand.vmem [shape: f32[2,1,32], index: 7, kind: input, shape index: {}]   ;;  %s4113_s8 = inlined_call_operand.hbm [shape: bf16[2,32,32], index: 8, kind: input, shape index: {}]   ;;  %s4114_s9 = inlined_call_operand.vmem [shape: f32[2,1,32], index: 9, kind: input, shape index: {}]   ;;  %s4115_s10 = inlined_call_operand.vmem [shape: f32[2,1,32], index: 10, kind: input, shape index: {}]   ;;  %s4116_s11 = inlined_call_operand.vmem [shape: f32[2,1,32], index: 11, kind: input, shape index: {}]   ;;  %s4117_s12 = inlined_call_operand.hbm [shape: bf16[2,32,64], index: 12, kind: input, shape index: {}]   ;;  %s4118_s13 = inlined_call_operand.vmem [shape: f32[2,1,64], index: 13, kind: input, shape index: {}]   ;;  %s4119_s14 = inlined_call_operand.vmem [shape: bf16[2,64,32], index: 14, kind: input, shape index: {}]   ;;  %s4120_s15 = inlined_call_operand.vmem [shape: f32[2,1,32], index: 15, kind: input, shape index: {}]   ;;  %s4121_s16 = inlined_call_operand.vmem [shape: f32[2,1,32], index: 16, kind: input, shape index: {}]   ;;  %s4122_s17 = inlined_call_operand.vmem [shape: f32[2,1,32], index: 17, kind: input, shape index: {}]   ;;  %s4123_s18 = inlined_call_operand.hbm [shape: f32[16,32], index: 18, kind: output, shape index: {0}]   ;;  %s4124_s19 = inlined_call_operand.hbm [shape: f32[2,8], index: 19, kind: output, shape index: {1}]  }
   0x1   :  { %4143 = sst [smem:[#allocation21_spill]] %s4105_s0 }
   0x2   :  { %4144 = sst [smem:[#allocation22_spill]] %s4106_s1 }
   0x3   :  { %4145 = sst [smem:[#allocation23_spill]] %s4107_s2 }
   0x4   :  { %4146 = sst [smem:[#allocation24_spill]] %s4108_s3 }
   0x5   :  { %4147 = sst [smem:[#allocation25_spill]] %s4109_s4 }
   0x6   :  { %4148 = sst [smem:[#allocation26_spill]] %s4111_s6 }
   0x7   :  { %4149 = sst [smem:[#allocation27_spill]] %s4112_s7 }
   0x8   :  { %4150 = sst [smem:[#allocation28_spill]] %s4113_s8 }
   0x9   :  { %4151 = sst [smem:[#allocation29_spill]] %s4114_s9 }
   0xa   :  { %4152 = sst [smem:[#allocation30_spill]] %s4115_s10 }
   0xb   :  { %4153 = sst [smem:[#allocation31_spill]] %s4116_s11 }
   0xc   :  { %4154 = sst [smem:[#allocation32_spill]] %s4117_s12 }
   0xd   :  { %4155 = sst [smem:[#allocation33_spill]] %s4118_s13 }
   0xe   :  { %4156 = sst [smem:[#allocation34_spill]] %s4119_s14 }
   0xf   :  { %4157 = sst [smem:[#allocation35_spill]] %s4120_s15 }
  0x10   :  { %4158 = sst [smem:[#allocation36_spill]] %s4121_s16 }
  0x11   :  { %4159 = sst [smem:[#allocation37_spill]] %s4122_s17 }
  0x12   :  { %4160 = sst [smem:[#allocation38_spill]] %s4123_s18 }
  0x13   :  { %4161 = sst [smem:[#allocation39_spill]] %s4124_s19 }
  0x14   :  { %25 = vsyncpa [#allocation4], 0 }
  0x15   :  { %26 = vsyncpa [#allocation7], 0 }
  0x16   :  { %27 = vsyncpa [#allocation5], 0 }
  0x17   :  { %28 = vsyncpa [#allocation12], 0  ;;  %s3494_s0 = smov 0   ;;  %s3496_s30 = smov 0  }
  0x18   :  { %s3498_s20 = smov 0   ;;  %s3500_s21 = smov 0  }
  0x19 LB: > { %4162 = sst [smem:[#allocation18_spill]] %s3371_s20  ;;  %s3513_s1 = sadd.s32 4294967295, %s3375_s21   ;;  %s3375_s21 = sphi %s3500_s21, %s4220_s21   ;;  %s3371_s20 = sphi %s3498_s20, %s4222_s20   ;;  %s3367_s30 = sphi %s3496_s30, %s4224_s30   ;;  %s3363_s0 = sphi %s3494_s0, %s4223_s0  }
  0x1a   : > { %s3516_s22 = sadd.s32 1, %s3375_s21   ;;  %s239_s23 = sadd.s32 1, %s3371_s20 }
  0x1b   : > { %4163 = sst [smem:[#allocation19_spill]] %s3516_s22  ;;  %s236_s2 = ssub.s32 %s3375_s21, %s3516_s22 }
  0x1c   : > { %p237_p0 = scmp.eq.s32.totalorder %s236_s2, 0  ;;  %p246_p1 = scmp.ne.s32.totalorder %s3371_s20, %s3367_s30 }
  0x1d   : > { %p247_p2 = scmp.eq.s32.totalorder %s3375_s21, 0  ;;  %p252_p3 = scmp.ne.s32.totalorder %s3367_s30, %s3363_s0 }
  0x1e   : > { %s3526_s24 = scalar_select %p237_p0, %s3371_s20, %s239_s23  }
  0x1f   : > { %p3528_p4 = por %p247_p2, %p246_p1  ;;  %p4132_p5 = scmp.eq.s32.totalorder %s3513_s1, 0 }
  0x20   : > { %4164 = sst [smem:[#allocation20_spill]] %s3526_s24  ;;  %p2669_p6 = scmp.ge.s32.totalorder %s3375_s21, 1 }
  0x21   : > { %p539_p7 = scmp.lt.s32.totalorder %s3375_s21, 3  ;;  %p3537_p8 = por %p4132_p5, %p252_p3 }
  0x22   : > { %s3377_s27 = smov [#allocation3]   ;;  %p3017_p13 = scmp.lt.s32.totalorder %s3375_s21, 2 }
  0x23   : > { %s4166_s3 = scalar_select %p3537_p8, 1, 0 }
  0x24   : > { %p3542_p10 = pnand %p2669_p6, %p539_p7  ;;  %s551_s28 = sshll.u32 %s3377_s27, 4  ;;  %s552_s28 = int_to_ptr.vmem [resolvable:$true] %s551_s28 }
  0x25   : > { %s620_s0 = sand.u32 1, %s3375_s21   ;;  %s622_s2 = sand.u32 1, %s3371_s20  }
  0x26   : > { %s4167_s26 = scalar_select %p3542_p10, 1, 0 }
  0x27   : > { %p3001_p11 = pneg %p3542_p10  ;;  %p3559_p0 = pnand %p3017_p13, %p3528_p4 }
  0x28   : > { %s4170_s22 = sld [smem:[#allocation21_spill]] }
  0x29   : > { %p3550_p12 = pnand %p3001_p11, %p4132_p5 }
  0x2a   : > { %s4169_s23 = scalar_select %p3559_p0, 1, 0 }
  0x2b   : > { %p4137_p2 = pneg %p3550_p12 }
  0x2e   : > { %s3157_s18 = scalar_lea.hbm %s4170_s22, 256 }
  0x2f   : > { %p3158_p1 = scmp.ne.s32.totalorder %s4170_s22, %s3157_s18  ;;  %p3164_p4 = scmp.lt.u32.totalorder %s3157_s18, %s4170_s22 }
  0x31   : > { %p3160_p3 = pnand %p4137_p2, %p3158_p1 }
  0x33   : > { %p3161_p6 = pneg %p3160_p3 }
  0x35   : > { %p3166_p7 = pnand %p3164_p4, %p3161_p6 }
  0x37   : > { %3169 = shalt.err (!%p3166_p7)
}
  0x38   : > { %s3170_s16 = scalar_lea.vmem %s552_s28, 256  ;;  %p3178_p5 = scmp.lt.s32.totalorder %s552_s28, %s552_s28 }
  0x39   : > { %p3171_p11 = scmp.ne.s32.totalorder %s552_s28, %s3170_s16  ;;  %p3179_p8 = scmp.lt.s32.totalorder %s3170_s16, %s3170_s16 }
  0x3b   : > { %p3173_p13 = pnand %p3171_p11, %p4137_p2  ;;  %p3180_p10 = por %p3179_p8, %p3178_p5 }
  0x3d   : > { %p3174_p9 = pneg %p3173_p13 }
  0x3f   : > { %p3181_p0 = pnand %p3180_p10, %p3174_p9 }
  0x41   : > { %3184 = shalt.err (!%p3181_p0)
}
  0x42   : > { %s4136_s17 = smov 128   ;;  %s4138_s18 = smov 8  }
  0x43   : > { %3004 = dma.hbm_to_vmem [thread:$0]  (!%p3550_p12), %s4170_s22, 256, %s552_s28, [#allocation4], %s4136_s17, %s4136_s17, %s4138_s18  }
  0x44   : > { %s3588_s24 = sshll.u32 %s622_s2, 4  ;;  %s2754_s16 = sshll.u32 %s3375_s21, 8 }
  0x45   : > { %s4171_s8 = sld [smem:[#allocation28_spill]]  ;;  %s624_s14 = scalar_lea.vmem [#allocation8], %s3588_s24 }
  0x46   : > { %s631_s13 = sshll.u32 %s624_s14, 4  ;;  %s3601_s19 = scalar_lea.sflag [#allocation4], %s620_s0  ;;  %s3599_s13 = int_to_ptr.vmem [resolvable:$true] %s631_s13 }
  0x47   : > { %p4172_p8 = scmp.ne.s32.totalorder %s4169_s23, 0 }
  0x49   : > { %p4140_p9 = pneg %p4172_p8 }
  0x4b   : > { %s3596_s15 = scalar_lea.hbm %s4171_s8, %s2754_s16  ;;  %s3190_s27 = scalar_lea.hbm %s4171_s8, 512 }
  0x4c   : > { %s3185_s28 = scalar_lea.hbm %s3596_s15, 256  ;;  %p3191_p1 = scmp.lt.u32.totalorder %s3596_s15, %s4171_s8 }
  0x4d   : > { %p3186_p5 = scmp.ne.s32.totalorder %s3596_s15, %s3185_s28  ;;  %p3192_p3 = scmp.lt.u32.totalorder %s3190_s27, %s3185_s28 }
  0x4e   : > { %p3194_p4 = scmp.lt.u32.totalorder %s3185_s28, %s3596_s15 }
  0x4f   : > { %p3188_p10 = pnand %p4140_p9, %p3186_p5  ;;  %p3193_p6 = por %p3192_p3, %p3191_p1 }
  0x51   : > { %p3189_p0 = pneg %p3188_p10  ;;  %p3195_p7 = por %p3194_p4, %p3193_p6 }
  0x53   : > { %p3196_p11 = pnand %p3195_p7, %p3189_p0 }
  0x55   : > { %3199 = shalt.err (!%p3196_p11)
}
  0x56   : > { %s3200_s14 = scalar_lea.vmem %s3599_s13, 256  ;;  %s3380_s0 = smov [#allocation8]  }
  0x57   : > { %p3201_p13 = scmp.ne.s32.totalorder %s3599_s13, %s3200_s14  ;;  %s3205_s2 = sshll.u32 %s3380_s0, 4  ;;  %s3206_s2 = int_to_ptr.vmem [resolvable:$false] %s3205_s2 }
  0x58   : > { %s3207_s17 = scalar_lea.vmem %s3206_s2, 512  ;;  %p3208_p2 = scmp.lt.s32.totalorder %s3599_s13, %s3206_s2 }
  0x59   : > { %p3203_p5 = pnand %p3201_p13, %p4140_p9  ;;  %p3209_p1 = scmp.lt.s32.totalorder %s3207_s17, %s3200_s14 }
  0x5b   : > { %p3204_p10 = pneg %p3203_p5  ;;  %p3210_p3 = por %p3209_p1, %p3208_p2 }
  0x5d   : > { %p3211_p6 = pnand %p3210_p3, %p3204_p10 }
  0x5f   : > { %3214 = shalt.err (!%p3211_p6)
}
  0x60   : > { %s3381_s28 = smov 64   ;;  %s3382_s20 = smov 4  }
  0x61   : > { %3011 = dma.hbm_to_vmem [thread:$0]  (!%p4172_p8), %s3596_s15, 256, %s3599_s13, %s3601_s19, %s3381_s28, %s3381_s28, %s3382_s20  }
  0x62   : > { %s3383_s27 = smov [#allocation6]   ;;  %s4173_s12 = sld [smem:[#allocation32_spill]] }
  0x63   : > { %s564_s25 = sshll.u32 %s3383_s27, 4  ;;  %s663_s17 = scalar_lea.vmem [#allocation9], %s3588_s24  ;;  %s565_s25 = int_to_ptr.vmem [resolvable:$true] %s564_s25 }
  0x64   : > { %s670_s18 = sshll.u32 %s663_s17, 4  ;;  %s4174_s11 = sld [smem:[#allocation22_spill]]  ;;  %s3663_s18 = int_to_ptr.vmem [resolvable:$true] %s670_s18 }
  0x65   : > { %p4175_p0 = pneg %p3550_p12 }
  0x68   : > { %s3637_s2 = scalar_lea.hbm %s4173_s12, %s2754_s16 }
  0x6a   : > { %s3215_s10 = scalar_lea.hbm %s4174_s11, 256 }
  0x6b   : > { %p3216_p2 = scmp.ne.s32.totalorder %s4174_s11, %s3215_s10  ;;  %p3222_p11 = scmp.lt.u32.totalorder %s3215_s10, %s4174_s11 }
  0x6d   : > { %p3218_p4 = pnand %p3216_p2, %p4175_p0 }
  0x6f   : > { %p3219_p7 = pneg %p3218_p4 }
  0x71   : > { %p3224_p13 = pnand %p3222_p11, %p3219_p7 }
  0x73   : > { %3227 = shalt.err (!%p3224_p13)
}
  0x74   : > { %s3228_s21 = scalar_lea.vmem %s565_s25, 256  ;;  %p4176_p10 = pmov %p4175_p0 }
  0x75   : > { %p3229_p5 = scmp.ne.s32.totalorder %s565_s25, %s3228_s21  ;;  %p3236_p6 = scmp.lt.s32.totalorder %s565_s25, %s565_s25 }
  0x76   : > { %p3237_p9 = scmp.lt.s32.totalorder %s3228_s21, %s3228_s21 }
  0x77   : > { %p3231_p1 = pnand %p3229_p5, %p4176_p10 }
  0x78   : > { %p3238_p8 = por %p3237_p9, %p3236_p6 }
  0x79   : > { %p3232_p3 = pneg %p3231_p1 }
  0x7b   : > { %p3239_p0 = pnand %p3238_p8, %p3232_p3 }
  0x7d   : > { %3242 = shalt.err (!%p3239_p0)
}
  0x7e   : > { %s4177_s7 = smov 8   ;;  %s4178_s8 = smov 128  }
  0x7f   : > { %3007 = dma.hbm_to_vmem [thread:$0]  (!%p3550_p12), %s4174_s11, 256, %s565_s25, [#allocation7], %s4178_s8, %s4178_s8, %s4177_s7  }
  0x80   : > { %s3243_s22 = scalar_lea.hbm %s3637_s2, 256  ;;  %p4179_p8 = scmp.ne.s32.totalorder %s4169_s23, 0 }
  0x81   : > { %p3244_p9 = scmp.ne.s32.totalorder %s3637_s2, %s3243_s22  ;;  %s3248_s16 = scalar_lea.hbm %s4173_s12, 512 }
  0x82   : > { %p4180_p2 = pneg %p4179_p8  ;;  %p3249_p11 = scmp.lt.u32.totalorder %s3637_s2, %s4173_s12 }
  0x83   : > { %p3250_p13 = scmp.lt.u32.totalorder %s3248_s16, %s3243_s22  ;;  %p3252_p10 = scmp.lt.u32.totalorder %s3243_s22, %s3637_s2 }
  0x84   : > { %p3246_p4 = pnand %p3244_p9, %p4180_p2 }
  0x85   : > { %p3251_p5 = por %p3250_p13, %p3249_p11 }
  0x86   : > { %p3247_p7 = pneg %p3246_p4 }
  0x87   : > { %p3253_p12 = por %p3252_p10, %p3251_p5 }
  0x89   : > { %p3254_p1 = pnand %p3253_p12, %p3247_p7 }
  0x8b   : > { %3257 = shalt.err (!%p3254_p1)
}
  0x8c   : > { %s3258_s25 = scalar_lea.vmem %s3663_s18, 256  ;;  %p4181_p6 = pmov %p4180_p2 }
  0x8d   : > { %p3259_p3 = scmp.ne.s32.totalorder %s3663_s18, %s3258_s25  ;;  %s3384_s0 = smov [#allocation9]  }
  0x8e   : > { %s3263_s17 = sshll.u32 %s3384_s0, 4  ;;  %s3264_s17 = int_to_ptr.vmem [resolvable:$false] %s3263_s17 }
  0x8f   : > { %p3261_p0 = pnand %p3259_p3, %p4181_p6  ;;  %s3265_s13 = scalar_lea.vmem %s3264_s17, 512 }
  0x90   : > { %p3266_p2 = scmp.lt.s32.totalorder %s3663_s18, %s3264_s17  ;;  %p3267_p4 = scmp.lt.s32.totalorder %s3265_s13, %s3258_s25 }
  0x91   : > { %p3262_p9 = pneg %p3261_p0 }
  0x92   : > { %p3268_p11 = por %p3267_p4, %p3266_p2 }
  0x94   : > { %p3269_p13 = pnand %p3268_p11, %p3262_p9 }
  0x96   : > { %3272 = shalt.err (!%p3269_p13)
}
  0x97   : > { %3014 = dma.hbm_to_vmem [thread:$0]  (!%p4179_p8), %s3637_s2, 256, %s3663_s18, %s3601_s19, %s3381_s28, %s3381_s28, %s3382_s20  }
  0x98   : > { %p4182_p7 = scmp.ne.s32.totalorder %s4167_s26, 0 }
  0x99   : > { %p4183_p5 = scmp.eq.s32.totalorder (!%p4182_p7), %s3513_s1, 0 }
  0x9a   : > { %714 = sbr.rel (%p4182_p7) target bundleno = 3938 (0xf62), region = 92 }
  0xa1   : > { %3342 = dma.done.wait (%p4183_p5), [#allocation4], 256   ;;  %p4184_p10 = pmov %p4183_p5 }
  0xa2   : > { %p4185_p12 = pmov %p4183_p5 }
  0xa3   : > { %3344 = vsyncadd (%p4184_p10), [#allocation4], 4294967040 }
  0xa4   : > { %3346 = dma.done.wait (%p4185_p12), [#allocation7], 256   ;;  %p4186_p1 = pmov %p4183_p5 }
  0xa5   : > { %s724_s23 = sand.u32 1, %s3513_s1   ;;  %s726_s18 = sand.u32 1, %s3367_s30  }
  0xa6   : > { %3348 = vsyncadd (%p4186_p1), [#allocation7], 4294967040  ;;  %s3704_s19 = sshll.u32 %s726_s18, 4  ;;  %s725_s26 = scalar_lea.sflag [#allocation4], %s724_s23 }
  0xa7   : > { %s3707_s28 = scalar_lea.vmem [#allocation8], %s3704_s19  ;;  %p4187_p8 = scmp.ne.s32.totalorder %s4166_s3, 0 }
  0xa9   : > { %3350 = dma.done.wait (%p4187_p8), %s725_s26, 512  }
  0xaa   : > { %3352 = vsyncadd (%p4187_p8), %s725_s26, 4294966784  ;;  %p842_p3 = scmp.lt.s32.totalorder %s3513_s1, 1  ;;  %s4189_s10 = sld [smem:[#allocation23_spill]] }
  0xab   : > { %s4190_s4 = sld [smem:[#allocation25_spill]]  ;;  %s4191_s6 = sld [smem:[#allocation26_spill]] }
  0xac   : > { %s3715_s20 = scalar_select %p842_p3, %s3513_s1, 1 }
  0xad   : > { %s4192_s26 = sld [smem:[#allocation27_spill]]  ;;  %s4197_s18 = sld [smem:[#allocation34_spill]] }
  0xae   : > { %s2756_s2 = sshll.u32 %s3715_s20, 4  ;;  %s4198_s8 = sld [smem:[#allocation35_spill]] }
  0xaf   : > { %s4199_s24 = sld [smem:[#allocation36_spill]]  ;;  %s4200_s14 = sld [smem:[#allocation37_spill]] }
  0xb0   : > { %s3725_s22 = scalar_lea.vmem %s4189_s10, %s2756_s2  ;;  %s737_s11 = scalar_lea.vmem [#allocation9], %s3704_s19 }
  0xb1   : > { %s854_s16 = scalar_lea.vmem %s4190_s4, %s2756_s2  ;;  %s3737_s13 = scalar_lea.vmem %s4191_s6, %s2756_s2 }
  0xb2   : > { %s4196_s2 = sld [smem:[#allocation33_spill]]  ;;  %s2759_s6 = sshll.u32 %s3715_s20, 5 }
  0xb3   : > { %s865_s3 = scalar_lea.vmem %s4192_s26, %s3715_s20  ;;  %s3763_s26 = scalar_lea.vmem %s4197_s18, %s2759_s6 }
  0xb4   : > { %s885_s9 = scalar_lea.vmem %s4198_s8, %s3715_s20  ;;  %p4201_p6 = scmp.ne.s32.totalorder %s3513_s1, 0 }
  0xb5   : > { %s888_s7 = scalar_lea.vmem %s4199_s24, %s3715_s20  ;;  %s891_s25 = scalar_lea.vmem %s4200_s14, %s3715_s20  ;;  %v897_v0 = vld [vmem:[#allocation3] sm:$0xff] (!%p4201_p6)  ;;  %vm899_vm0 = vcmask (!%p4201_p6), 261120   ;;  %v898_v1 = vld [vmem:[#allocation3 + $0x8] sm:$0xff] (!%p4201_p6) }
  0xb6   : > { %896 = sbr.rel (%p4201_p6) target bundleno = 189 (0xbd), region = 112  ;;  %900 = vst.msk [vmem:[#allocation2] sm:$0xff] (!%p4201_p6), %vm899_vm0, %v897_v0  ;;  %901 = vst.msk [vmem:[#allocation2 + $0x8] sm:$0xff] (!%p4201_p6), %vm899_vm0, %v898_v1 }
  0xb8   : > { %s877_s17 = scalar_lea.vmem %s4196_s2, %s3715_s20 }
  0xbd PF: > { %v3101_v2 = vld [vmem:[%s854_s16] sm:$0xff]   ;;  %v3385_v3 = vmov 0.0   ;;  %v3102_v4 = vld [vmem:[%s854_s16 + $0x8] sm:$0xff]   ;;  %vm3386_vm1 = vmmov 0   ;;  %vm930_vm2 = vcmask 261120   ;;  %vm1103_vm3 = vcmask 64512  }
  0xbe   : > { %2825 = vmatprep.subr.bf16.mxu1 %v3385_v3  ;;  %2817 = vmatprep.subr.bf16.mxu0 %v3385_v3  ;;  %v3784_v5 = vld [vmem:[#allocation2] sm:$0xff]  ;;  %v3786_v6 = vld [vmem:[#allocation2 + $0x8] sm:$0xff]  ;;  %s4203_s2 = sld [smem:[#allocation24_spill]]  ;;  %vm3817_vm4 = vmpackc.low %vm1103_vm3, %vm1103_vm3  ;;  %vm1195_vm5 = vcmask 130048   ;;  %vm1516_vm6 = vcmask 1043456   ;;  %s3389_s8 = smov 104  }
  0xbf   : > { %2826 = vmatpush3.bf16.msra.mxu1 %v3101_v2  ;;  %2829 = vmatprep.mubr.msk.bf16.mxu1 %vm3386_vm1, %v3385_v3  ;;  %v3103_v7 = vld [vmem:[%s3725_s22] sm:$0xff]   ;;  %v3104_v8 = vld [vmem:[%s3725_s22 + $0x8] sm:$0xff]   ;;  %v904_v9 = vpack.c.bf16 %v3786_v6, %v3784_v5  ;;  %s4202_s22 = scalar_lea.vmem %s4110_s5, %s3715_s20  ;;  %s4208_s24 = sld [smem:[#allocation29_spill]]  ;;  %vm2304_vm7 = vcmask 523264   ;;  %vm2406_vm8 = vcmask 1040384   ;;  %vm2408_vm9 = vcmask 58368  }
  0xc0   : > { %2827 = vmatprep.subr.bf16.mxu1 %v3385_v3  ;;  %2821 = vmatprep.mubr.msk.bf16.mxu0 %vm3386_vm1, %v3385_v3  ;;  %v3105_v10 = vld [vmem:[%s3737_s13] sm:$0xff]   ;;  %v3106_v11 = vld [vmem:[%s3737_s13 + $0x8] sm:$0xff]   ;;  %s3387_s13 = smov 120   ;;  %s4210_s19 = sld [smem:[#allocation30_spill]] }
  0xc1   : > { %2818 = vmatpush3.bf16.msra.mxu0 %v3103_v7  ;;  %v2697_v12 = vld [vmem:[%s4202_s22] ss:$0 sm:$0xff]  ;;  %v3853_v49 = vld [vmem:[#allocation6 + $0x8] sm:$0xff]  ;;  %s4212_s12 = sld [smem:[#allocation31_spill]]  ;;  %p3020_p0 = scmp.eq.s32.totalorder %s3513_s1, 1 }
  0xc2   : > { %2819 = vmatprep.subr.bf16.mxu0 %v3385_v3  ;;  %v2701_v29 = vld [vmem:[%s865_s3] ss:$0 sm:$0xff]  ;;  %s3388_s3 = smov 112  }
  0xc3   : > { %2828 = vmatpush3.bf16.msra.mxu1 %v3102_v4  ;;  %v3856_v51 = vld [vmem:[#allocation6] sm:$0xff] }
  0xc4   : > { %s4204_s23 = scalar_lea.vmem %s4203_s2, %s3715_s20 }
  0xc5   : > { %2820 = vmatpush3.bf16.msra.mxu0 %v3104_v8  ;;  %v2693_v15 = vld [vmem:[%s4204_s23] ss:$0 sm:$0xff]  ;;  %s4209_s4 = scalar_lea.vmem %s4208_s24, %s3715_s20 }
  0xc6   : > { %2830 = vmatmul.mubr.msk.bf16.vlgmr.msra.gmra.mrb[0].mxu1 %vm930_vm2, %v904_v9  ;;  %2833 = vmatprep.subr.bf16.mxu0 %v3385_v3  ;;  %s4211_s14 = scalar_lea.vmem %s4210_s19, %s3715_s20 }
  0xc7   : > { %s4213_s22 = scalar_lea.vmem %s4212_s12, %s3715_s20 }
  0xc8   : > { %2822 = vmatmul.mubr.msk.bf16.vlgmr.msra.gmra.mrb[0].mxu0 %vm930_vm2, %v904_v9 }
  0xc9   : > { %2837 = vmatprep.mubr.msk.bf16.mxu0 %vm3386_vm1, %v3385_v3  ;;  %2834 = vmatpush3.bf16.msra.mxu0 %v3105_v10 }
  0xca   : > { %2835 = vmatprep.subr.bf16.mxu0 %v3385_v3 }
  0xcd   : > { %2836 = vmatpush3.bf16.msra.mxu0 %v3106_v11 }
  0xd0   : > { %2838 = vmatmul.mubr.msk.bf16.vlgmr.msra.gmra.mrb[4].mxu0 %vm930_vm2, %v904_v9 }
 0x199   : > { %v1032_v13 = vpop.f32.mrb[0].mxu1 }
 0x19a   : > { %v2831_v14 = vpop.f32.mrb[1].mxu1  ;;  %v1033_v17 = vadd.f32 %v2697_v12, %v1032_v13 }
 0x19b   : > { %v1035_v16 = vpop.f32.mrb[2].mxu1  ;;  %v968_v20 = vpop.f32.mrb[0].mxu0 }
 0x19c   : > { %v1036_v18 = vadd.f32 %v2697_v12, %v1035_v16  ;;  %v2832_v19 = vpop.f32.mrb[3].mxu1  ;;  %v3821_v22 = vadd.f32 %v2693_v15, %v968_v20  ;;  %v2823_v23 = vpop.f32.mrb[1].mxu0 }
 0x19d   : > { %v971_v26 = vpop.f32.mrb[2].mxu0  ;;  %v1512_v19 = vld [vmem:[%s3707_s28 + $0x4] sm:$0xf] }
 0x19e   : > { %v3823_v24 = vpack.i.bf16 %v1036_v18, %v1033_v17  ;;  %v2941_v25 = vpack.c.bf16 %v1036_v18, %v1033_v17  ;;  %v3825_v27 = vadd.f32 %v2693_v15, %v971_v26  ;;  %v2824_v28 = vpop.f32.mrb[3].mxu0  ;;  %2845 = vmatprep.mubr.msk.f32.mxu1 %vm1103_vm3, %v3821_v22 }
 0x1a0   : > { %3072 = vrot.lane.b32.xlu0 %v3823_v24, %s3387_s13  ;;  %2943 = vmatprep.subr.msk.bf16.mxu1 %vm3817_vm4, %v2941_v25 }
 0x1a1   : > { %2946 = vmatpush3.bf16.xpose.msk.msra.mxu1 %vm3817_vm4, %v2941_v25  ;;  %1305 = vrot.lane.b32.xlu1 %v3825_v27, %s3387_s13 }
 0x1a3   : > { %v1096_v30 = vpop.f32.mrb[4].mxu0 }
 0x1a4   : > { %1303 = vrot.lane.b32.xlu0 %v3821_v22, %s3387_s13  ;;  %v1097_v31 = vadd.f32 %v2701_v29, %v1096_v30  ;;  %v2839_v32 = vpop.f32.mrb[5].mxu0 }
 0x1a5   : > { %v1099_v33 = vpop.f32.mrb[6].mxu0 }
 0x1a6   : > { %v1100_v34 = vadd.f32 %v2701_v29, %v1099_v33  ;;  %v2840_v35 = vpop.f32.mrb[7].mxu0  ;;  %v1518_v29 = vsel %vm1516_vm6, %v1512_v19, 0 }
 0x1a8   : > { %2846 = vmatmul.mubr.msk.f32.vlgmr.msra.gmra.mrb[4].mxu1 %vm1103_vm3, %v3825_v27  ;;  %v2947_v36 = vpack.c.bf16 %v1100_v34, %v1097_v31  ;;  %v3867_v1 = vpack.i.bf16 %v1100_v34, %v1097_v31 }
 0x1aa   : > { %2948 = vmatprep.subr.bf16.mxu1 %v2947_v36 }
 0x1ab   : > { %2950 = vmatpush3.bf16.msra.mxu1 %v2947_v36 }
 0x1ac   : > { %2875 = vmatprep.subr.bf16.mxu1 %v3385_v3 }
 0x212   : > { %v3073_v37 = vpop.permute.xlu0 %3072 }
 0x213   : > { %v3075_v38 = vunpack.i.h.bf16 %v3073_v37  ;;  %v3074_v39 = vunpack.i.l.bf16 %v3073_v37  ;;  %v1306_v42 = vpop.permute.xlu1 %1305 }
 0x215   : > { %v2951_v40 = vpack.c.bf16 %v3075_v38, %v3074_v39 }
 0x216   : > { %v1304_v41 = vpop.permute.xlu0 %1303 }
 0x217   : > { %2953 = vmatprep.subr.msk.bf16.mxu0 %vm3817_vm4, %v2951_v40  ;;  %2859 = vmatprep.mubr.msk.f32.mxu0 %vm1103_vm3, %v1304_v41 }
 0x218   : > { %2956 = vmatpush3.bf16.xpose.msk.msra.mxu0 %vm3817_vm4, %v2951_v40 }
 0x21f   : > { %2860 = vmatmul.mubr.msk.f32.vlgmr.msra.gmra.mrb[8].mxu0 %vm1103_vm3, %v1306_v42 }
 0x27b   : > { %v2847_v43 = vpop.f32.mrb[4].mxu1 }
 0x27c   : > { %v1182_v44 = vpop.f32.mrb[5].mxu1  ;;  %v1192_v4 = vmul.f32 0.35355338, %v2847_v43 }
 0x27d   : > { %v1191_v2 = vmul.f32 0.35355338, %v1182_v44 }
 0x27e   : > { %v1194_v8 = vadd.f32 %v1192_v4, %v3853_v49 }
 0x27f   : > { %v1193_v7 = vadd.f32 %v1191_v2, %v3856_v51 }
 0x280   : > { %v1199_v10 = vsel %vm1195_vm5, %v1194_v8, -inf }
 0x281   : > { %v1196_v9 = vsel %vm1195_vm5, %v1193_v7, -inf }
 0x2f2   : > { %v2861_v45 = vpop.f32.mrb[8].mxu0 }
 0x2f3   : > { %v1395_v46 = vmul.f32 0.35355338, %v2861_v45  ;;  %v1385_v47 = vpop.f32.mrb[9].mxu0 }
 0x2f4   : > { %v1394_v48 = vmul.f32 0.35355338, %v1385_v47 }
 0x2f5   : > { %v1397_v50 = vadd.f32 %v1395_v46, %v3853_v49 }
 0x2f6   : > { %v1396_v52 = vadd.f32 %v1394_v48, %v3856_v51 }
 0x2f7   : > { %v1401_v53 = vsel %vm1195_vm5, %v1397_v50, -inf }
 0x2f8   : > { %1402 = vmax.xlane.f32.xlu0 %v1401_v53  ;;  %v1398_v54 = vsel %vm1195_vm5, %v1396_v52, -inf }
 0x2f9   : > { %1399 = vmax.xlane.f32.xlu1 %v1398_v54  ;;  %v1302_v54 = vld [vmem:[%s3707_s28] sm:$0xf] }
 0x385   : > { %v1403_v55 = vpop.xlane.xlu0 %1402 }
 0x386   : > { %v1405_v56 = vsub.f32 %v1397_v50, %v1403_v55  ;;  %v1400_v57 = vpop.xlane.xlu1 %1399  ;;  %v1565_v55 = vsel %vm1516_vm6, %v1302_v54, 0 }
 0x387   : > { %v1404_v58 = vsub.f32 %v1396_v52, %v1400_v57 }
 0x388   : > { %v1408_v59 = vmul.f32 1.442695, %v1405_v56 }
 0x389   : > { %v1406_v60 = vmul.f32 1.442695, %v1404_v58 }
 0x38a   : > { %3113 = vpow2.f32 %v1408_v59 }
 0x38b   : > { %3115 = vpow2.f32 %v1406_v60 }
 0x394   : > { %v3114_v61 = vpop.eup %3113 }
 0x395   : > { %v3116_v62 = vpop.eup %3115  ;;  %v1413_v63 = vsel %vm1195_vm5, %v3114_v61, 0.0 }
 0x396   : > { %1414 = vadd.xlane.f32.xlu1 %v1413_v63  ;;  %v1410_v0 = vsel %vm1195_vm5, %v3116_v62, 0.0 }
 0x397   : > { %1411 = vadd.xlane.f32.xlu0 %v1410_v0 }
 0x3a7   : > { %3082 = vrot.lane.b32.xlu1 %v3823_v24, %s3388_s3 }
 0x3ab   : > { %1608 = vrot.lane.b32.xlu1 %v3821_v22, %s3388_s3 }
 0x3ad   : > { %3077 = vrot.lane.b32.xlu0 %v3867_v1, %s3387_s13 }
 0x3b1   : > { %1610 = vrot.lane.b32.xlu0 %v3825_v27, %s3388_s3 }
 0x3cf   : > { %1197 = vmax.xlane.f32.xlu1 %v1196_v9 }
 0x3d0   : > { %1200 = vmax.xlane.f32.xlu0 %v1199_v10 }
 0x423   : > { %v1415_v11 = vpop.xlane.xlu1 %1414 }
 0x424   : > { %3117 = vrcp.f32 %v1415_v11  ;;  %v1412_v12 = vpop.xlane.xlu0 %1411 }
 0x425   : > { %3119 = vrcp.f32 %v1412_v12 }
 0x427   : > { %v3083_v17 = vpop.permute.xlu1 %3082 }
 0x428   : > { %v3078_v13 = vpop.permute.xlu0 %3077  ;;  %v3085_v23 = vunpack.i.h.bf16 %v3083_v17  ;;  %v3084_v25 = vunpack.i.l.bf16 %v3083_v17 }
 0x429   : > { %v3080_v14 = vunpack.i.h.bf16 %v3078_v13  ;;  %v3079_v15 = vunpack.i.l.bf16 %v3078_v13 }
 0x42a   : > { %v2961_v30 = vpack.c.bf16 %v3085_v23, %v3084_v25 }
 0x42b   : > { %v2957_v16 = vpack.c.bf16 %v3080_v14, %v3079_v15  ;;  %v1609_v31 = vpop.permute.xlu1 %1608 }
 0x42c   : > { %v1611_v32 = vpop.permute.xlu0 %1610 }
 0x42d   : > { %2958 = vmatprep.subr.bf16.mxu0 %v2957_v16 }
 0x42e   : > { %v3118_v18 = vpop.eup %3117  ;;  %2960 = vmatpush3.bf16.msra.mxu0 %v2957_v16 }
 0x42f   : > { %v3120_v20 = vpop.eup %3119  ;;  %2869 = vmatprep.subr.bf16.mxu0 %v3385_v3  ;;  %v3881_v28 = vmul.f32 %v3118_v18, %v3114_v61 }
 0x430   : > { %v3879_v26 = vmul.f32 %v3120_v20, %v3116_v62 }
 0x432   : > { %2866 = vmatprep.mubr.msk.f32.mxu0 %vm1195_vm5, %v3879_v26 }
 0x433   : > { %2867 = vmatmul.mubr.msk.f32.vlgmr.msra.gmra.mrb[10].mxu0 %vm1195_vm5, %v3881_v28 }
 0x434   : > { %2870 = vmatpush3.bf16.msra.mxu0 %v1518_v29  ;;  %2871 = vmatprep.mubr.msk.bf16.mxu0 %vm3386_vm1, %v3385_v3 }
 0x435   : > { %2963 = vmatprep.subr.msk.bf16.mxu0 %vm3817_vm4, %v2961_v30 }
 0x45c   : > { %v1198_v33 = vpop.xlane.xlu1 %1197 }
 0x45d   : > { %v1202_v34 = vsub.f32 %v1193_v7, %v1198_v33  ;;  %v1201_v35 = vpop.xlane.xlu0 %1200 }
 0x45e   : > { %v1203_v36 = vsub.f32 %v1194_v8, %v1201_v35 }
 0x45f   : > { %v1204_v37 = vmul.f32 1.442695, %v1202_v34 }
 0x460   : > { %v1206_v38 = vmul.f32 1.442695, %v1203_v36 }
 0x461   : > { %3121 = vpow2.f32 %v1204_v37 }
 0x462   : > { %3123 = vpow2.f32 %v1206_v38 }
 0x46b   : > { %v3122_v39 = vpop.eup %3121 }
 0x46c   : > { %v3124_v40 = vpop.eup %3123  ;;  %v1208_v41 = vsel %vm1195_vm5, %v3122_v39, 0.0 }
 0x46d   : > { %1209 = vadd.xlane.f32.xlu0 %v1208_v41  ;;  %v1211_v42 = vsel %vm1195_vm5, %v3124_v40, 0.0 }
 0x46e   : > { %1212 = vadd.xlane.f32.xlu1 %v1211_v42 }
 0x4fa   : > { %v1210_v43 = vpop.xlane.xlu0 %1209 }
 0x4fb   : > { %3125 = vrcp.f32 %v1210_v43  ;;  %v1213_v44 = vpop.xlane.xlu1 %1212 }
 0x4fc   : > { %3127 = vrcp.f32 %v1213_v44 }
 0x505   : > { %v3126_v45 = vpop.eup %3125 }
 0x506   : > { %v3128_v46 = vpop.eup %3127  ;;  %v2868_v47 = vpop.f32.mrb[10].mxu0  ;;  %v3894_v48 = vmul.f32 %v3126_v45, %v3122_v39 }
 0x507   : > { %v3896_v50 = vmul.f32 %v3128_v46, %v3124_v40  ;;  %v1502_v52 = vpop.f32.mrb[11].mxu0 }
 0x508   : > { %v1511_v53 = vpack.c.bf16 %v2868_v47, %v1502_v52  ;;  %2852 = vmatprep.mubr.msk.f32.mxu1 %vm1195_vm5, %v3894_v48  ;;  %v1420_v44 = vadd.f32 %v3879_v26, %v3894_v48  ;;  %v1815_v26 = vld [vmem:[%s3707_s28 + $0x8] sm:$0xf] }
 0x509   : > { %2853 = vmatmul.mubr.msk.f32.vlgmr.msra.gmra.mrb[6].mxu1 %vm1195_vm5, %v3896_v50  ;;  %v1421_v43 = vadd.f32 %v3881_v28, %v3896_v50  ;;  %v1820_v48 = vsel %vm1516_vm6, %v1815_v26, 0 }
 0x50a   : > { %2872 = vmatmul.mubr.msk.bf16.vlgmr.msra.gmra.mrb[12].mxu0 %vm1103_vm3, %v1511_v53  ;;  %2877 = vmatprep.mubr.msk.bf16.mxu1 %vm3386_vm1, %v3385_v3 }
 0x50b   : > { %2966 = vmatpush3.bf16.xpose.msk.msra.mxu0 %vm3817_vm4, %v2961_v30  ;;  %2885 = vmatprep.mubr.msk.f32.mxu0 %vm1103_vm3, %v1609_v31 }
 0x50c   : > { %2895 = vmatprep.subr.bf16.mxu0 %v3385_v3  ;;  %2876 = vmatpush3.bf16.msra.mxu1 %v1565_v55 }
 0x512   : > { %2886 = vmatmul.mubr.msk.f32.vlgmr.msra.gmra.mrb[16].mxu0 %vm1103_vm3, %v1611_v32 }
 0x513   : > { %2897 = vmatprep.mubr.msk.bf16.mxu0 %vm3386_vm1, %v3385_v3  ;;  %2896 = vmatpush3.bf16.msra.mxu0 %v1820_v48 }
 0x5dc   : > { %v2854_v56 = vpop.f32.mrb[6].mxu1 }
 0x5dd   : > { %v1292_v57 = vpop.f32.mrb[7].mxu1  ;;  %v1554_v58 = vpop.f32.mrb[12].mxu0 }
 0x5de   : > { %v1301_v59 = vpack.c.bf16 %v2854_v56, %v1292_v57  ;;  %v2873_v60 = vpop.f32.mrb[13].mxu0 }
 0x5df   : > { %v1557_v61 = vpop.f32.mrb[14].mxu0 }
 0x5e0   : > { %v2874_v62 = vpop.f32.mrb[15].mxu0  ;;  %2878 = vmatmul.mubr.msk.bf16.vlgmr.msra.gmra.mrb[8].mxu1 %vm1103_vm3, %v1301_v59 }
 0x5e5   : > { %v2887_v63 = vpop.f32.mrb[16].mxu0 }
 0x5e6   : > { %v1700_v0 = vmul.f32 0.35355338, %v2887_v63  ;;  %v1690_v2 = vpop.f32.mrb[17].mxu0 }
 0x5e7   : > { %v1699_v4 = vmul.f32 0.35355338, %v1690_v2 }
 0x5e8   : > { %v1702_v7 = vadd.f32 %v1700_v0, %v3853_v49 }
 0x5e9   : > { %v1701_v8 = vadd.f32 %v1699_v4, %v3856_v51 }
 0x5ea   : > { %v1706_v9 = vsel %vm1195_vm5, %v1702_v7, -inf }
 0x5eb   : > { %1707 = vmax.xlane.f32.xlu1 %v1706_v9  ;;  %v1703_v10 = vsel %vm1195_vm5, %v1701_v8, -inf }
 0x5ec   : > { %1704 = vmax.xlane.f32.xlu0 %v1703_v10 }
 0x678   : > { %v1708_v11 = vpop.xlane.xlu1 %1707 }
 0x679   : > { %v1710_v12 = vsub.f32 %v1702_v7, %v1708_v11  ;;  %v1705_v13 = vpop.xlane.xlu0 %1704 }
 0x67a   : > { %v1709_v14 = vsub.f32 %v1701_v8, %v1705_v13 }
 0x67b   : > { %v1713_v15 = vmul.f32 1.442695, %v1710_v12 }
 0x67c   : > { %v1711_v16 = vmul.f32 1.442695, %v1709_v14 }
 0x67d   : > { %3129 = vpow2.f32 %v1713_v15 }
 0x67e   : > { %3131 = vpow2.f32 %v1711_v16 }
 0x687   : > { %v3130_v17 = vpop.eup %3129 }
 0x688   : > { %v3132_v18 = vpop.eup %3131  ;;  %v1718_v19 = vsel %vm1195_vm5, %v3130_v17, 0.0 }
 0x689   : > { %1719 = vadd.xlane.f32.xlu1 %v1718_v19  ;;  %v1715_v20 = vsel %vm1195_vm5, %v3132_v18, 0.0 }
 0x68a   : > { %1716 = vadd.xlane.f32.xlu0 %v1715_v20 }
 0x69a   : > { %3092 = vrot.lane.b32.xlu1 %v3823_v24, %s3389_s8 }
 0x69e   : > { %1865 = vrot.lane.b32.xlu1 %v3821_v22, %s3389_s8 }
 0x6a0   : > { %3087 = vrot.lane.b32.xlu0 %v3867_v1, %s3388_s3 }
 0x6a4   : > { %1867 = vrot.lane.b32.xlu0 %v3825_v27, %s3389_s8 }
 0x6b3   : > { %v1601_v23 = vpop.f32.mrb[8].mxu1 }
 0x6b4   : > { %v3929_v25 = vadd.f32 %v1601_v23, %v1554_v58  ;;  %v2879_v29 = vpop.f32.mrb[9].mxu1 }
 0x6b5   : > { %v1604_v30 = vpop.f32.mrb[10].mxu1 }
 0x6b6   : > { %v3931_v31 = vadd.f32 %v1604_v30, %v1557_v61  ;;  %v2880_v32 = vpop.f32.mrb[11].mxu1 }
 0x716   : > { %v1720_v33 = vpop.xlane.xlu1 %1719 }
 0x717   : > { %3133 = vrcp.f32 %v1720_v33  ;;  %v1717_v24 = vpop.xlane.xlu0 %1716  ;;  %v2072_v33 = vld [vmem:[%s3707_s28 + $0xc] sm:$0xf] }
 0x718   : > { %3135 = vrcp.f32 %v1717_v24  ;;  %v2077_v24 = vsel %vm1516_vm6, %v2072_v33, 0 }
 0x71a   : > { %v3093_v34 = vpop.permute.xlu1 %3092 }
 0x71b   : > { %v3088_v22 = vpop.permute.xlu0 %3087  ;;  %v3095_v35 = vunpack.i.h.bf16 %v3093_v34  ;;  %v3094_v36 = vunpack.i.l.bf16 %v3093_v34 }
 0x71c   : > { %v3090_v37 = vunpack.i.h.bf16 %v3088_v22  ;;  %v3089_v38 = vunpack.i.l.bf16 %v3088_v22 }
 0x71d   : > { %v2971_v27 = vpack.c.bf16 %v3095_v35, %v3094_v36 }
 0x71e   : > { %v2967_v39 = vpack.c.bf16 %v3090_v37, %v3089_v38  ;;  %v1866_v52 = vpop.permute.xlu1 %1865  ;;  %v2733_v37 = vld [vmem:[%s4209_s4] ss:$0 sm:$0xff] }
 0x71f   : > { %v1868_v28 = vpop.permute.xlu0 %1867 }
 0x720   : > { %2968 = vmatprep.subr.bf16.mxu1 %v2967_v39 }
 0x721   : > { %v3134_v40 = vpop.eup %3133  ;;  %2970 = vmatpush3.bf16.msra.mxu1 %v2967_v39 }
 0x722   : > { %v3136_v41 = vpop.eup %3135  ;;  %v1724_v42 = vmul.f32 %v3134_v40, %v3130_v17  ;;  %2973 = vmatprep.subr.msk.bf16.mxu1 %vm3817_vm4, %v2971_v27 }
 0x723   : > { %v1723_v45 = vmul.f32 %v3136_v41, %v3132_v18 }
 0x724   : > { %v3939_v46 = vadd.f32 %v1724_v42, %v1421_v43 }
 0x725   : > { %2892 = vmatprep.mubr.msk.f32.mxu1 %vm1195_vm5, %v1723_v45  ;;  %v3942_v47 = vadd.f32 %v1723_v45, %v1420_v44 }
 0x726   : > { %2893 = vmatmul.mubr.msk.f32.vlgmr.msra.gmra.mrb[12].mxu1 %vm1195_vm5, %v1724_v42 }
 0x727   : > { %2905 = vmatprep.mubr.msk.f32.mxu1 %vm1103_vm3, %v1866_v52 }
 0x72a   : > { %2976 = vmatpush3.bf16.xpose.msk.msra.mxu1 %vm3817_vm4, %v2971_v27 }
 0x72b   : > { %2915 = vmatprep.subr.bf16.mxu1 %v3385_v3 }
 0x731   : > { %2906 = vmatmul.mubr.msk.f32.vlgmr.msra.gmra.mrb[14].mxu1 %vm1103_vm3, %v1868_v28 }
 0x732   : > { %2917 = vmatprep.mubr.msk.bf16.mxu1 %vm3386_vm1, %v3385_v3  ;;  %2916 = vmatpush3.bf16.msra.mxu1 %v2077_v24 }
 0x733   : > { %2929 = vmatprep.subr.bf16.mxu1 %v3385_v3 }
 0x7f9   : > { %v2894_v50 = vpop.f32.mrb[12].mxu1 }
 0x7fa   : > { %v1805_v53 = vpop.f32.mrb[13].mxu1 }
 0x7fb   : > { %v1814_v54 = vpack.c.bf16 %v2894_v50, %v1805_v53 }
 0x7fd   : > { %2898 = vmatmul.mubr.msk.bf16.vlgmr.msra.gmra.mrb[20].mxu0 %vm1103_vm3, %v1814_v54 }
 0x804   : > { %v2907_v55 = vpop.f32.mrb[14].mxu1 }
 0x805   : > { %v1957_v21 = vmul.f32 0.35355338, %v2907_v55  ;;  %v1947_v56 = vpop.f32.mrb[15].mxu1 }
 0x806   : > { %v1956_v57 = vmul.f32 0.35355338, %v1947_v56  ;;  %v3108_v56 = vld [vmem:[%s737_s11 + $0x8] sm:$0xff]  }
 0x807   : > { %v1959_v58 = vadd.f32 %v1957_v21, %v3853_v49 }
 0x808   : > { %v1958_v59 = vadd.f32 %v1956_v57, %v3856_v51 }
 0x809   : > { %v1963_v60 = vsel %vm1195_vm5, %v1959_v58, -inf }
 0x80a   : > { %1964 = vmax.xlane.f32.xlu0 %v1963_v60  ;;  %v1960_v61 = vsel %vm1195_vm5, %v1958_v59, -inf }
 0x80b   : > { %1961 = vmax.xlane.f32.xlu1 %v1960_v61 }
 0x897   : > { %v1965_v62 = vpop.xlane.xlu0 %1964 }
 0x898   : > { %v1967_v63 = vsub.f32 %v1959_v58, %v1965_v62  ;;  %v1962_v0 = vpop.xlane.xlu1 %1961 }
 0x899   : > { %v1966_v2 = vsub.f32 %v1958_v59, %v1962_v0 }
 0x89a   : > { %v1970_v4 = vmul.f32 1.442695, %v1967_v63 }
 0x89b   : > { %v1968_v7 = vmul.f32 1.442695, %v1966_v2  ;;  %v2734_v2 = vld [vmem:[%s4211_s14] ss:$0 sm:$0xff] }
 0x89c   : > { %3137 = vpow2.f32 %v1970_v4 }
 0x89d   : > { %3139 = vpow2.f32 %v1968_v7 }
 0x8a6   : > { %v3138_v8 = vpop.eup %3137 }
 0x8a7   : > { %v3140_v9 = vpop.eup %3139  ;;  %v1975_v49 = vsel %vm1195_vm5, %v3138_v8, 0.0 }
 0x8a8   : > { %1976 = vadd.xlane.f32.xlu1 %v1975_v49  ;;  %v1972_v51 = vsel %vm1195_vm5, %v3140_v9, 0.0 }
 0x8a9   : > { %1973 = vadd.xlane.f32.xlu0 %v1972_v51 }
 0x8bf   : > { %3097 = vrot.lane.b32.xlu0 %v3867_v1, %s3389_s8 }
 0x8d0   : > { %v1856_v10 = vpop.f32.mrb[20].mxu0 }
 0x8d1   : > { %v1863_v11 = vadd.f32 %v1856_v10, %v3929_v25  ;;  %v2899_v12 = vpop.f32.mrb[21].mxu0 }
 0x8d2   : > { %v1859_v13 = vpop.f32.mrb[22].mxu0  ;;  %v3109_v12 = vld [vmem:[%s3763_s26] sm:$0xff]  }
 0x8d3   : > { %v1864_v14 = vadd.f32 %v1859_v13, %v3931_v31  ;;  %v2900_v15 = vpop.f32.mrb[23].mxu0  ;;  %v3110_v13 = vld [vmem:[%s3763_s26 + $0x8] sm:$0xff]  }
 0x8d4   : > { %v3112_v15 = vld [vmem:[%s3763_s26 + $0x18] sm:$0xff]  }
 0x935   : > { %v1977_v16 = vpop.xlane.xlu1 %1976 }
 0x936   : > { %3141 = vrcp.f32 %v1977_v16  ;;  %v1974_v17 = vpop.xlane.xlu0 %1973  ;;  %v2736_v16 = vld [vmem:[%s877_s17] ss:$0 sm:$0xff] }
 0x937   : > { %3143 = vrcp.f32 %v1974_v17 }
 0x93a   : > { %v3098_v18 = vpop.permute.xlu0 %3097 }
 0x93b   : > { %v3100_v19 = vunpack.i.h.bf16 %v3098_v18  ;;  %v3099_v20 = vunpack.i.l.bf16 %v3098_v18 }
 0x93d   : > { %v2977_v23 = vpack.c.bf16 %v3100_v19, %v3099_v20 }
 0x93f   : > { %2978 = vmatprep.subr.bf16.mxu0 %v2977_v23 }
 0x940   : > { %v3142_v29 = vpop.eup %3141  ;;  %2980 = vmatpush3.bf16.msra.mxu0 %v2977_v23 }
 0x941   : > { %v3144_v1 = vpop.eup %3143  ;;  %v1981_v30 = vmul.f32 %v3142_v29, %v3138_v8  ;;  %2921 = vmatprep.subr.bf16.mxu0 %v3385_v3 }
 0x942   : > { %v1980_v25 = vmul.f32 %v3144_v1, %v3140_v9  ;;  %v2735_v9 = vld [vmem:[%s4213_s22] ss:$0 sm:$0xff] }
 0x943   : > { %v3967_v31 = vadd.f32 %v1981_v30, %v3939_v46 }
 0x944   : > { %2912 = vmatprep.mubr.msk.f32.mxu0 %vm1195_vm5, %v1980_v25  ;;  %v3971_v32 = vadd.f32 %v1980_v25, %v3942_v47 }
 0x945   : > { %2913 = vmatmul.mubr.msk.f32.vlgmr.msra.gmra.mrb[18].mxu0 %vm1195_vm5, %v1981_v30 }
 0x946   : > { %2925 = vmatprep.mubr.msk.bf16.mxu0 %vm3386_vm1, %v3385_v3 }
 0xa18   : > { %v2914_v34 = vpop.f32.mrb[18].mxu0 }
 0xa19   : > { %v2062_v22 = vpop.f32.mrb[19].mxu0 }
 0xa1a   : > { %v2071_v35 = vpack.c.bf16 %v2914_v34, %v2062_v22 }
 0xa1c   : > { %2918 = vmatmul.mubr.msk.bf16.vlgmr.msra.gmra.mrb[16].mxu1 %vm1103_vm3, %v2071_v35 }
 0xa1d   : > { %2937 = vmatprep.mubr.msk.bf16.mxu1 %vm3386_vm1, %v3385_v3  ;;  %2930 = vmatpush3.bf16.msra.mxu1 %v3109_v12 }
 0xa1e   : > { %2931 = vmatprep.subr.bf16.mxu1 %v3385_v3 }
 0xa21   : > { %2932 = vmatpush3.bf16.msra.mxu1 %v3110_v13 }
 0xa22   : > { %2933 = vmatprep.subr.bf16.mxu1 %v3385_v3 }
 0xaef   : > { %v2113_v36 = vpop.f32.mrb[16].mxu1 }
 0xaf0   : > { %v2120_v38 = vadd.f32 %v2113_v36, %v1863_v11  ;;  %v2919_v39 = vpop.f32.mrb[17].mxu1 }
 0xaf1   : > { %v2116_v27 = vpop.f32.mrb[18].mxu1 }
 0xaf2   : > { %v2129_v40 = vadd.f32 %v2733_v37, %v2120_v38  ;;  %v2121_v41 = vadd.f32 %v2116_v27, %v1864_v14  ;;  %v2920_v42 = vpop.f32.mrb[19].mxu1  ;;  %v3111_v14 = vld [vmem:[%s3763_s26 + $0x10] sm:$0xff]  }
 0xaf3   : > { %2934 = vmatpush3.bf16.msra.mxu1 %v3111_v14 }
 0xaf4   : > { %v2130_v43 = vadd.f32 %v2733_v37, %v2121_v41  ;;  %v2131_v44 = vadd.f32 %v2129_v40, %v3784_v5  ;;  %2935 = vmatprep.subr.bf16.mxu1 %v3385_v3 }
 0xaf6   : > { %v2135_v45 = vsel %vm930_vm2, %v2131_v44, 0.0  ;;  %v2132_v46 = vadd.f32 %v2130_v43, %v3786_v6  ;;  %v3107_v6 = vld [vmem:[%s737_s11] sm:$0xff]  }
 0xaf7   : > { %2136 = vadd.xlane.f32.xlu1 %v2135_v45  ;;  %2922 = vmatpush3.bf16.msra.mxu0 %v3107_v6  ;;  %v2740_v45 = vld [vmem:[%s885_s9] ss:$0 sm:$0xff]  ;;  %s3390_s9 = smov [#allocation11]  }
 0xaf8   : > { %v2138_v47 = vsel %vm930_vm2, %v2132_v46, 0.0  ;;  %2923 = vmatprep.subr.bf16.mxu0 %v3385_v3  ;;  %2936 = vmatpush3.bf16.msra.mxu1 %v3112_v15  ;;  %s2430_s18 = sshll.u32 %s3390_s9, 4  ;;  %s2431_s18 = int_to_ptr.vmem [resolvable:$true] %s2430_s18 }
 0xaf9   : > { %p3280_p11 = scmp.lt.s32.totalorder %s2431_s18, %s2431_s18 }
 0xafb   : > { %2139 = vadd.xlane.f32.xlu1 %v2138_v47  ;;  %2924 = vmatpush3.bf16.msra.mxu0 %v3108_v56 }
 0xb84   : > { %v2137_v52 = vpop.xlane.xlu1 %2136 }
 0xb85   : > { %v2142_v28 = vmul.f32 0.03125, %v2137_v52 }
 0xb87   : > { %v2144_v26 = vsub.f32 %v2131_v44, %v2142_v28 }
 0xb88   : > { %v2140_v48 = vpop.xlane.xlu1 %2139 }
 0xb89   : > { %v2143_v50 = vmul.f32 0.03125, %v2140_v48  ;;  %v2146_v53 = vmul.f32 %v2144_v26, %v2144_v26 }
 0xb8b   : > { %v2145_v54 = vsub.f32 %v2132_v46, %v2143_v50  ;;  %v2148_v55 = vsel %vm930_vm2, %v2146_v53, 0.0 }
 0xb8c   : > { %2149 = vadd.xlane.f32.xlu1 %v2148_v55 }
 0xb8d   : > { %v2147_v5 = vmul.f32 %v2145_v54, %v2145_v54 }
 0xb8f   : > { %v2151_v21 = vsel %vm930_vm2, %v2147_v5, 0.0 }
 0xb90   : > { %2152 = vadd.xlane.f32.xlu1 %v2151_v21 }
 0xc19   : > { %v2150_v57 = vpop.xlane.xlu1 %2149 }
 0xc1a   : > { %v2154_v58 = vmul.f32 0.03125, %v2150_v57 }
 0xc1c   : > { %v2156_v59 = vadd.f32 1e-12, %v2154_v58 }
 0xc1d   : > { %v2153_v60 = vpop.xlane.xlu1 %2152 }
 0xc1e   : > { %3145 = vrsqrt.f32 %v2156_v59  ;;  %v2155_v61 = vmul.f32 0.03125, %v2153_v60 }
 0xc20   : > { %v2157_v62 = vadd.f32 1e-12, %v2155_v61 }
 0xc22   : > { %3147 = vrsqrt.f32 %v2157_v62 }
 0xc28   : > { %v3146_v63 = vpop.eup %3145 }
 0xc29   : > { %v2160_v0 = vmul.f32 %v3146_v63, %v2144_v26  ;;  %v2400_v63 = vmul.f32 0.25, %v3967_v31 }
 0xc2b   : > { %v2168_v7 = vmul.f32 %v2734_v2, %v2160_v0  ;;  %v2402_v0 = vrot.slane %v2400_v63, 7 }
 0xc2c   : > { %v3148_v4 = vpop.eup %3147 }
 0xc2d   : > { %v2161_v8 = vmul.f32 %v3148_v4, %v2145_v54  ;;  %v2176_v51 = vadd.f32 %v2735_v9, %v2168_v7 }
 0xc2f   : > { %v2169_v49 = vmul.f32 %v2734_v2, %v2161_v8 }
 0xc31   : > { %v2177_v10 = vadd.f32 %v2735_v9, %v2169_v49 }
 0xc33   : > { %v2178_v11 = vpack.c.bf16 %v2177_v10, %v2176_v51 }
 0xc35   : > { %2926 = vmatmul.mubr.msk.bf16.vlgmr.msra.gmra.mrb[24].mxu0 %vm930_vm2, %v2178_v11 }
 0xd08   : > { %v2239_v17 = vpop.f32.mrb[24].mxu0 }
 0xd09   : > { %v2240_v18 = vadd.f32 %v2736_v16, %v2239_v17  ;;  %v2927_v19 = vpop.f32.mrb[25].mxu0 }
 0xd0a   : > { %v2242_v20 = vpop.f32.mrb[26].mxu0 }
 0xd0b   : > { %v2248_v23 = vmul.f32 0.044715, %v2240_v18  ;;  %v2243_v29 = vadd.f32 %v2736_v16, %v2242_v20  ;;  %v2928_v1 = vpop.f32.mrb[27].mxu0  ;;  %v2246_v27 = vmul.f32 0.5, %v2240_v18 }
 0xd0d   : > { %v2250_v30 = vmul.f32 %v2248_v23, %v2240_v18  ;;  %v2249_v25 = vmul.f32 0.044715, %v2243_v29  ;;  %v2247_v40 = vmul.f32 0.5, %v2243_v29 }
 0xd0f   : > { %v2252_v33 = vmul.f32 %v2250_v30, %v2240_v18  ;;  %v2251_v24 = vmul.f32 %v2249_v25, %v2243_v29 }
 0xd11   : > { %v2254_v34 = vadd.f32 %v2252_v33, %v2240_v18  ;;  %v2253_v22 = vmul.f32 %v2251_v24, %v2243_v29 }
 0xd13   : > { %v2256_v3 = vmul.f32 0.7978846, %v2254_v34  ;;  %v2255_v35 = vadd.f32 %v2253_v22, %v2243_v29 }
 0xd15   : > { %3149 = vtanh.f32 %v2256_v3  ;;  %v2257_v36 = vmul.f32 0.7978846, %v2255_v35 }
 0xd17   : > { %3151 = vtanh.f32 %v2257_v36 }
 0xd1f   : > { %v3150_v37 = vpop.eup %3149 }
 0xd20   : > { %v2260_v38 = vadd.f32 1.0, %v3150_v37 }
 0xd21   : > { %v3152_v39 = vpop.eup %3151 }
 0xd22   : > { %v2261_v41 = vadd.f32 1.0, %v3152_v39  ;;  %v2262_v42 = vmul.f32 %v2260_v38, %v2246_v27 }
 0xd24   : > { %v2263_v43 = vmul.f32 %v2261_v41, %v2247_v40 }
 0xd26   : > { %v2264_v44 = vpack.c.bf16 %v2263_v43, %v2262_v42 }
 0xd28   : > { %2938 = vmatmul.mubr.msk.bf16.vlgmr.msra.gmra.mrb[20].mxu1 %vm2304_vm7, %v2264_v44 }
 0xdfb   : > { %v2342_v46 = vpop.f32.mrb[20].mxu1 }
 0xdfc   : > { %v2343_v47 = vadd.f32 %v2740_v45, %v2342_v46  ;;  %v2939_v52 = vpop.f32.mrb[21].mxu1 }
 0xdfd   : > { %v2345_v28 = vpop.f32.mrb[22].mxu1 }
 0xdfe   : > { %v2346_v26 = vadd.f32 %v2740_v45, %v2345_v28  ;;  %v2940_v48 = vpop.f32.mrb[23].mxu1  ;;  %v2349_v50 = vadd.f32 %v2343_v47, %v2176_v51  ;;  %v2399_v51 = vmul.f32 0.25, %v3971_v32 }
 0xe00   : > { %v2353_v53 = vsel %vm930_vm2, %v2349_v50, 0.0  ;;  %v2350_v54 = vadd.f32 %v2346_v26, %v2177_v10 }
 0xe01   : > { %2354 = vadd.xlane.f32.xlu1 %v2353_v53 }
 0xe02   : > { %v2356_v55 = vsel %vm930_vm2, %v2350_v54, 0.0 }
 0xe05   : > { %2357 = vadd.xlane.f32.xlu1 %v2356_v55 }
 0xe8e   : > { %v2355_v5 = vpop.xlane.xlu1 %2354 }
 0xe8f   : > { %v2359_v21 = vmul.f32 0.03125, %v2355_v5 }
 0xe91   : > { %v2361_v6 = vsub.f32 %v2349_v50, %v2359_v21 }
 0xe92   : > { %v2358_v56 = vpop.xlane.xlu1 %2357 }
 0xe93   : > { %v2360_v57 = vmul.f32 0.03125, %v2358_v56  ;;  %v2363_v58 = vmul.f32 %v2361_v6, %v2361_v6 }
 0xe95   : > { %v2362_v59 = vsub.f32 %v2350_v54, %v2360_v57  ;;  %v2365_v60 = vsel %vm930_vm2, %v2363_v58, 0.0 }
 0xe96   : > { %2366 = vadd.xlane.f32.xlu0 %v2365_v60 }
 0xe97   : > { %v2364_v61 = vmul.f32 %v2362_v59, %v2362_v59 }
 0xe99   : > { %v2368_v62 = vsel %vm930_vm2, %v2364_v61, 0.0 }
 0xe9a   : > { %2369 = vadd.xlane.f32.xlu1 %v2368_v62 }
 0xeab   : > { %2403 = vrot.lane.b32.xlu1 %v2402_v0, %s3387_s13  ;;  %s3273_s13 = scalar_lea.vmem %s2431_s18, 32 }
 0xeac   : > { %p3274_p9 = scmp.ne.s32.totalorder %s2431_s18, %s3273_s13  ;;  %p3281_p13 = scmp.lt.s32.totalorder %s3273_s13, %s3273_s13 }
 0xeae   : > { %p3275_p2 = pnand %p3274_p9, %p3020_p0  ;;  %p3282_p7 = por %p3281_p13, %p3280_p11 }
 0xeb0   : > { %p3276_p4 = pneg %p3275_p2 }
 0xeb2   : > { %p3283_p5 = pnand %p3282_p7, %p3276_p4 }
 0xf23   : > { %v2367_v2 = vpop.xlane.xlu0 %2366 }
 0xf24   : > { %v2371_v4 = vmul.f32 0.03125, %v2367_v2 }
 0xf26   : > { %v2373_v7 = vadd.f32 1e-12, %v2371_v4 }
 0xf27   : > { %v2370_v8 = vpop.xlane.xlu1 %2369 }
 0xf28   : > { %3153 = vrsqrt.f32 %v2373_v7  ;;  %v2372_v9 = vmul.f32 0.03125, %v2370_v8 }
 0xf2a   : > { %v2374_v49 = vadd.f32 1e-12, %v2372_v9 }
 0xf2b   : > { %v2404_v10 = vpop.permute.xlu1 %2403 }
 0xf2c   : > { %3155 = vrsqrt.f32 %v2374_v49  ;;  %v2407_v31 = vsel %vm2406_vm8, %v2399_v51, %v2404_v10 }
 0xf2d   : > { %2409 = vst.msk [vmem:[#allocation11] sm:$0x3] %vm2408_vm9, %v2407_v31 }
 0xf2e   : > { %3286 = shalt.err (!%p3283_p5)
}
 0xf2f   : > { %s4216_s3 = sld [smem:[#allocation39_spill]] }
 0xf35   : > { %s3287_s8 = scalar_lea.hbm %s4216_s3, 32 }
 0xf36   : > { %p3288_p10 = scmp.ne.s32.totalorder %s4216_s3, %s3287_s8  ;;  %p3293_p8 = scmp.lt.u32.totalorder %s3287_s8, %s4216_s3 }
 0xf38   : > { %p3289_p12 = pnand %p3288_p10, %p3020_p0 }
 0xf3a   : > { %p3290_p1 = pneg %p3289_p12 }
 0xf3c   : > { %p3295_p3 = pnand %p3293_p8, %p3290_p1 }
 0xf3e   : > { %3298 = shalt.err (!%p3295_p3)
}
 0xf3f   : > { %2996 = dma.vmem_to_hbm [thread:$0]  (%p3020_p0), %s2431_s18, 32, %s4216_s3, [#allocation12]   ;;  %v3154_v32 = vpop.eup %3153  ;;  %v2746_v11 = vld [vmem:[%s888_s7] ss:$0 sm:$0xff] }
 0xf40   : > { %v2377_v12 = vmul.f32 %v3154_v32, %v2361_v6  ;;  %v2747_v13 = vld [vmem:[%s891_s25] ss:$0 sm:$0xff]  ;;  %v3156_v15 = vpop.eup %3155  ;;  %s3391_s16 = smov [#allocation10]  }
 0xf41   : > { %v2378_v16 = vmul.f32 %v3156_v15, %v2362_v59  ;;  %s2416_s0 = sshll.u32 %s3391_s16, 4  ;;  %s2417_s0 = int_to_ptr.vmem [resolvable:$true] %s2416_s0 }
 0xf42   : > { %v2385_v14 = vmul.f32 %v2746_v11, %v2377_v12  ;;  %s3299_s20 = scalar_lea.vmem %s2417_s0, 256  ;;  %p3306_p4 = scmp.lt.s32.totalorder %s2417_s0, %s2417_s0 }
 0xf43   : > { %v2386_v18 = vmul.f32 %v2746_v11, %v2378_v16  ;;  %p3300_p6 = scmp.ne.s32.totalorder %s2417_s0, %s3299_s20  ;;  %p3307_p11 = scmp.lt.s32.totalorder %s3299_s20, %s3299_s20 }
 0xf44   : > { %v2393_v17 = vadd.f32 %v2747_v13, %v2385_v14 }
 0xf45   : > { %v2394_v19 = vadd.f32 %v2747_v13, %v2386_v18  ;;  %p3301_p9 = pnand %p3300_p6, %p3020_p0  ;;  %p3308_p13 = por %p3307_p11, %p3306_p4 }
 0xf46   : > { %2395 = vst.msk [vmem:[#allocation2] sm:$0xff] %vm930_vm2, %v2393_v17  ;;  %2397 = vst.msk [vmem:[#allocation10] sm:$0xff] %vm930_vm2, %v2393_v17 }
 0xf47   : > { %2396 = vst.msk [vmem:[#allocation2 + $0x8] sm:$0xff] %vm930_vm2, %v2394_v19  ;;  %2398 = vst.msk [vmem:[#allocation10 + $0x8] sm:$0xff] %vm930_vm2, %v2394_v19  ;;  %p3302_p2 = pneg %p3301_p9 }
 0xf49   : > { %p3309_p7 = pnand %p3308_p13, %p3302_p2 }
 0xf4b   : > { %3312 = shalt.err (!%p3309_p7)
}
 0xf4c   : > { %s4219_s2 = sld [smem:[#allocation38_spill]] }
 0xf52   : > { %s3313_s17 = scalar_lea.hbm %s4219_s2, 256 }
 0xf53   : > { %p3314_p5 = scmp.ne.s32.totalorder %s4219_s2, %s3313_s17  ;;  %p3319_p1 = scmp.lt.u32.totalorder %s3313_s17, %s4219_s2 }
 0xf55   : > { %p3315_p10 = pnand %p3314_p5, %p3020_p0 }
 0xf57   : > { %p3316_p12 = pneg %p3315_p10 }
 0xf59   : > { %p3321_p8 = pnand %p3319_p1, %p3316_p12 }
 0xf5b   : > { %3324 = shalt.err (!%p3321_p8)
}
 0xf5c   : > { %s3392_s13 = smov 128   ;;  %s3393_s15 = smov 8  }
 0xf5d   : > { %2994 = dma.vmem_to_hbm [thread:$0]  (%p3020_p0), %s2417_s0, 256, %s4219_s2, [#allocation5], %s3392_s13, %s3392_s13, %s3393_s15  }
 0xf5e   : > { %3354 = dma.done.wait (%p3020_p0), [#allocation5], 256  }
 0xf5f   : > { %3356 = vsyncadd (%p3020_p0), [#allocation5], 4294967040 }
 0xf60   : > { %3358 = dma.done.wait (%p3020_p0), [#allocation12], 32  }
 0xf61   : > { %3360 = vsyncadd (%p3020_p0), [#allocation12], 4294967264 }
 0xf62 PF: > { %s4220_s21 = sld [smem:[#allocation19_spill]]  ;;  %s4221_s10 = sld [smem:[#allocation18_spill]] }
 0xf63   : > { %s4222_s20 = sld [smem:[#allocation20_spill]]  ;;  %s4223_s0 = smov %s3367_s30 }
 0xf68   : > { %p31_p3 = scmp.ge.s32.totalorder %s4220_s21, 4   ;;  %s4224_s30 = smov %s4221_s10 }
 0xf6a   :  { %33 = sbr.rel (!%p31_p3) target bundleno = 25 (0x19), region = 201 }
 0xf71   :  { %2447 = vsyncpa [#allocation4], 1 }
 0xf72   :  { %2449 = vsyncpa [#allocation4 + $0x1], 1 }
 0xf73   :  { %2450 = vsyncpa [#allocation7], 1 }
 0xf74   :  { %2451 = vsyncpa [#allocation5], 1 }
 0xf75   :  { %2453 = vsyncpa [#allocation5 + $0x1], 1 }
 0xf76   :  { %2454 = vsyncpa [#allocation12], 1 }

</bundles_post_ra>
